<compile_context>
chip_gen: v7x
topology: tpu7x:2x2x1
jax: 0.10.0
libtpu: 0.0.40
codegen_flags: <defaults>
</compile_context>

<pallas_src>
import functools

import jax
import jax.numpy as jnp
from jax import lax
from jax.experimental import pallas as pl
from jax.experimental.pallas import tpu as pltpu


# ----------------------------------------------------------------------------
# Fused-parameter slab layout (lane-group aligned blocks inside one array)
# ----------------------------------------------------------------------------
_H = 48            # fused hidden width, padded 45 -> 48 (multiple of 8 sublanes)
_HOUT = 16         # fused output head,  padded  9 -> 16
_COL_W2 = 0        # (48, 48)
_COL_W3 = 128      # (48, 48)
_COL_W4 = 256      # (16, 48)  stored in rows 0:16
_COL_W1 = 384      # (48, 8)   K padded 4 -> 8
_COL_B = 512       # biases: col 512=b1, 513=b2, 514=b3, 515=b4 (rows 0:16)
_SLAB_COLS = 640


# ----------------------------------------------------------------------------
# Kernel
# ----------------------------------------------------------------------------
def reconn_kernel(x_ref,      # (2, TM)    batch on lanes
                  w_ref,      # (48, 640)  packed fused weights + biases
                  lmbd_ref,   # (1,)       scalar in SMEM
                  o_ref,      # (1, TM)
                  *, use_bf16=False):
    x2 = x_ref[...]                              # (2, TM)
    x0 = x2[0:1, :]
    x1 = x2[1:2, :]

    # r = ||x||; single EUP rsqrt, no sqrt+divide chain.
    s = x0 * x0 + x1 * x1
    inv_r = lax.rsqrt(s)                         # (1, TM)
    r = s * inv_r
    xba = x2 * inv_r                             # (2, TM)  x / r

    # eta window: clip form, mathematically identical to the where()-masked
    # quintic in the PyTorch module (t<0 -> 1, t>1 -> 0).
    t = jnp.clip(2.5 * r - 1.25, 0.0, 1.0)
    eta = ((-6.0 * t + 15.0) * t - 10.0) * (t * t * t) + 1.0

    # ---- fused block-diagonal MLP: 8 -> 48 -> 48 -> 48 -> 16 ----------------
    w1 = w_ref[:, _COL_W1:_COL_W1 + 8]           # (48, 8)
    w2 = w_ref[:, _COL_W2:_COL_W2 + _H]          # (48, 48)
    w3 = w_ref[:, _COL_W3:_COL_W3 + _H]          # (48, 48)
    w4 = w_ref[0:_HOUT, _COL_W4:_COL_W4 + _H]    # (16, 48)
    b1 = w_ref[:, _COL_B + 0:_COL_B + 1]         # (48, 1)
    b2 = w_ref[:, _COL_B + 1:_COL_B + 2]
    b3 = w_ref[:, _COL_B + 2:_COL_B + 3]
    b4 = w_ref[0:_HOUT, _COL_B + 3:_COL_B + 4]   # (16, 1)

    mxu_dt = jnp.bfloat16 if use_bf16 else jnp.float32

    def dot(w, h):
        return jnp.dot(w.astype(mxu_dt), h.astype(mxu_dt),
                       preferred_element_type=jnp.float32)

    # first layer also on the MXU: input slab [x; x_ba; 0] (K padded to 8)
    zpad = jnp.zeros((4, x2.shape[1]), x2.dtype)
    xin = jnp.concatenate([x2, xba, zpad], axis=0)         # (8, TM)

    h = jnp.tanh(dot(w1, xin) + b1)                        # (48, TM)
    h = jnp.tanh(dot(w2, h) + b2)
    h = jnp.tanh(dot(w3, h) + b3)
    out = dot(w4, h) + b4                                  # (16, TM), rows 0..8 live

    # rows 0..5 = fcn_w outputs, rows 6..8 = fcn_phi outputs
    c0 = out[0:1, :]; c1 = out[1:2, :]; c2 = out[2:3, :]
    c3 = out[3:4, :]; c4 = out[4:5, :]; c5 = out[5:6, :]
    p0 = out[6:7, :]; p1 = out[7:8, :]; p2 = out[8:9, :]

    ax0 = jnp.abs(x0)
    ax1 = jnp.abs(x1)
    axba0 = ax0 * inv_r                          # |x_ba| reuses |x| and 1/r
    axba1 = ax1 * inv_r

    rp = (c0 + c3 * eta
          + (c1 + c4 * eta) * ax0
          + (c2 + c5 * eta) * ax1)

    lmbd = lmbd_ref[0]
    r_pow = jnp.exp(lmbd * jnp.log(r))           # r ** lmbd (r > 0 in domain)
    sp = (p0 + p1 * axba0 + p2 * axba1) * eta * r_pow

    o_ref[...] = rp + sp                         # lane-dense (1, TM) store


# ----------------------------------------------------------------------------
# Parameter fusion: PyTorch (out, in) weights -> single padded weight slab
# ----------------------------------------------------------------------------
def _fuse_params(params):
    (W1w, b1w, W2w, b2w, W3w, b3w, W4w, b4w,
     W1p, b1p, W2p, b2p, W3p, b3p, W4p, b4p) = params
    f32 = jnp.float32

    W1f = jnp.zeros((_H, 8), f32).at[0:30, 0:2].set(W1w).at[30:45, 2:4].set(W1p)
    W2f = jnp.zeros((_H, _H), f32).at[0:30, 0:30].set(W2w).at[30:45, 30:45].set(W2p)
    W3f = jnp.zeros((_H, _H), f32).at[0:30, 0:30].set(W3w).at[30:45, 30:45].set(W3p)
    W4f = jnp.zeros((_HOUT, _H), f32).at[0:6, 0:30].set(W4w).at[6:9, 30:45].set(W4p)
    b1f = jnp.zeros((_H,), f32).at[0:30].set(b1w).at[30:45].set(b1p)
    b2f = jnp.zeros((_H,), f32).at[0:30].set(b2w).at[30:45].set(b2p)
    b3f = jnp.zeros((_H,), f32).at[0:30].set(b3w).at[30:45].set(b3p)
    b4f = jnp.zeros((_HOUT,), f32).at[0:6].set(b4w).at[6:9].set(b4p)

    slab = jnp.zeros((_H, _SLAB_COLS), f32)
    slab = slab.at[:, _COL_W2:_COL_W2 + _H].set(W2f)
    slab = slab.at[:, _COL_W3:_COL_W3 + _H].set(W3f)
    slab = slab.at[0:_HOUT, _COL_W4:_COL_W4 + _H].set(W4f)
    slab = slab.at[:, _COL_W1:_COL_W1 + 8].set(W1f)
    slab = slab.at[:, _COL_B + 0].set(b1f)
    slab = slab.at[:, _COL_B + 1].set(b2f)
    slab = slab.at[:, _COL_B + 2].set(b3f)
    slab = slab.at[0:_HOUT, _COL_B + 3].set(b4f)
    return slab


# ----------------------------------------------------------------------------
# Wrapper
# ----------------------------------------------------------------------------
def _pick_tm(n):
    """Big lane-dense tiles (amortize ~0.35 us/grid-step fixed cost) while
    keeping the grid length >= 2 so both v7x TensorCores get work."""
    half = -(-n // 2)                            # ceil(n / 2)
    tm = ((half + 127) // 128) * 128             # round up to 128 lanes
    return int(min(4096, max(128, tm)))


@functools.partial(jax.jit, static_argnames=("tm", "use_bf16"))
def _reconn_forward(x, params, lmbd, *, tm, use_bf16):
    N = x.shape[0]
    wslab = _fuse_params(params)

    # batch on lanes; pad the tail to a multiple of tm. Pad value 1.0 keeps
    # r > 0 so padded lanes compute finite garbage that is sliced off below.
    xT = x.T                                     # (2, N)
    n_pad = (-N) % tm
    if n_pad:
        xT = jnp.pad(xT, ((0, 0), (0, n_pad)), constant_values=1.0)
    Np = N + n_pad

    kernel = functools.partial(reconn_kernel, use_bf16=use_bf16)
    out = pl.pallas_call(
        kernel,
        out_shape=jax.ShapeDtypeStruct((1, Np), jnp.float32),
        grid=(Np // tm,),
        in_specs=[
            pl.BlockSpec((2, tm), lambda i: (0, i)),
            pl.BlockSpec(wslab.shape, lambda i: (0, 0)),     # fetched once
            pl.BlockSpec(memory_space=pltpu.SMEM),            # lmbd scalar
        ],
        out_specs=pl.BlockSpec((1, tm), lambda i: (0, i)),
        compiler_params=pltpu.CompilerParams(
            dimension_semantics=("parallel",)),
    )(xT, wslab, lmbd)

    return out[:, :N].T                          # (N, 1)


def reconn_forward(x, params, lmbd, *, tm=None, use_bf16=False):
    """x: (N, 2) f32, params: 16 PyTorch-layout tensors, lmbd: (1,). -> (N, 1)."""
    if tm is None:
        tm = _pick_tm(x.shape[0])
    assert tm % 128 == 0
    return _reconn_forward(x, params, lmbd, tm=tm, use_bf16=use_bf16)


# ----------------------------------------------------------------------------
# Deterministic parameter construction (PyTorch nn.Linear layout & init)
# ----------------------------------------------------------------------------
def _make_linear(key, fan_in, fan_out):
    kw, kb = jax.random.split(key)
    bound = 1.0 / jnp.sqrt(jnp.float32(fan_in))
    W = jax.random.uniform(kw, (fan_out, fan_in), jnp.float32, -bound, bound)
    b = jax.random.uniform(kb, (fan_out,), jnp.float32, -bound, bound)
    return W, b


def make_params(key):
    dims_w = [(2, 30), (30, 30), (30, 30), (30, 6)]
    dims_phi = [(2, 15), (15, 15), (15, 15), (15, 3)]
    keys = jax.random.split(key, len(dims_w) + len(dims_phi))
    params = []
    for k, (fi, fo) in zip(keys[:4], dims_w):
        params.extend(_make_linear(k, fi, fo))
    for k, (fi, fo) in zip(keys[4:], dims_phi):
        params.extend(_make_linear(k, fi, fo))
    return tuple(params)


# ----------------------------------------------------------------------------
# Pure-JAX reference (faithful to the PyTorch module, original layout)
# ----------------------------------------------------------------------------
def _eta_ref(r):
    t = 2.5 * r - 1.25
    zeros = jnp.zeros_like(t)
    ones = jnp.ones_like(t)
    sublevel_mul = jnp.where((t < 0.0) | (t > 1.0), zeros, ones)
    sublevel_add = jnp.where(t > 1.0, -ones, zeros)
    t = t * sublevel_mul
    t = -6.0 * t ** 5 + 15.0 * t ** 4 - 10.0 * t ** 3 + 1.0
    return t + sublevel_add


def reconn_reference(x, params, lmbd):
    (W1w, b1w, W2w, b2w, W3w, b3w, W4w, b4w,
     W1p, b1p, W2p, b2p, W3p, b3p, W4p, b4p) = params

    def mlp(h, layers):
        for i, (W, b) in enumerate(layers):
            h = h @ W.T + b
            if i < len(layers) - 1:
                h = jnp.tanh(h)
        return h

    r = jnp.sqrt(jnp.sum(x * x, axis=1, keepdims=True))
    x_ba = x / r
    eta = _eta_ref(r)
    w = mlp(x, [(W1w, b1w), (W2w, b2w), (W3w, b3w), (W4w, b4w)])
    phi = mlp(x_ba, [(W1p, b1p), (W2p, b2p), (W3p, b3p), (W4p, b4p)])
    rp = (w[:, 0:1] + w[:, 3:4] * eta
          + (w[:, 1:2] + w[:, 4:5] * eta) * jnp.abs(x[:, 0:1])
          + (w[:, 2:3] + w[:, 5:6] * eta) * jnp.abs(x[:, 1:2]))
    sp = (phi[:, 0:1] + phi[:, 1:2] * jnp.abs(x_ba[:, 0:1])
          + phi[:, 2:3] * jnp.abs(x_ba[:, 1:2])) * eta * r ** lmbd[0]
    return rp + sp


# ----------------------------------------------------------------------------
if __name__ == "__main__":
    key = jax.random.PRNGKey(0)
    k_params, k_x = jax.random.split(key)

    params = make_params(k_params)
    lmbd = 0.5 * jnp.ones((1,), jnp.float32)      # self.lmbd

    # N not a multiple of 128: exercises tail padding. Auto tile -> tm=1536,
    # grid of 2 steps (megacore-friendly).
    N = 3000
    # points in [0.1, 1.1]^2 (away from the origin, as in the PDE domain)
    x = jax.random.uniform(k_x, (N, 2), jnp.float32, 0.1, 1.1)

    out = jax.block_until_ready(reconn_forward(x, params, lmbd))

    ref = reconn_reference(x, params, lmbd)
    assert out.shape == (N, 1)
    err = jnp.max(jnp.abs(out - ref))
    assert jnp.allclose(out, ref, rtol=1e-5, atol=1e-5), f"max abs err {err}"

    print("KERNEL_OK")
</pallas_src>

<mosaic_0001>
module attributes {stable_mosaic.version = 11 : i64} {
  func.func @reconn_kernel(%arg0: i32, %arg1: memref<2x1536xf32, #tpu.memory_space<vmem>>, %arg2: memref<48x640xf32, #tpu.memory_space<vmem>>, %arg3: memref<1xf32, #tpu.memory_space<smem>>, %arg4: memref<1x1536xf32, #tpu.memory_space<vmem>>) attributes {dimension_semantics = [#tpu.dimension_semantics<parallel>], iteration_bounds = array<i64: 2>, scalar_prefetch = 0 : i64, scratch_operands = 0 : i64, tpu.core_type = #tpu.core_type<tc>, window_params = [{transform_indices = @transform_0, window_bounds = array<i64: 2, 1536>}, {pipeline_mode = #tpu.pipeline_mode<synchronous>, transform_indices = @transform_1, window_bounds = array<i64: 48, 640>}, {transform_indices = @transform_2, window_bounds = array<i64: 1>}, {transform_indices = @transform_3, window_bounds = array<i64: 1, 1536>}]} {
    %c0 = arith.constant 0 : index
    %c0_0 = arith.constant 0 : index
    %0 = vector.load %arg1[%c0, %c0_0] : memref<2x1536xf32, #tpu.memory_space<vmem>>, vector<2x1536xf32>
    %1 = vector.extract_strided_slice %0 {offsets = [0, 0], sizes = [1, 1536], strides = [1, 1]} : vector<2x1536xf32> to vector<1x1536xf32>
    %2 = vector.extract_strided_slice %0 {offsets = [1, 0], sizes = [1, 1536], strides = [1, 1]} : vector<2x1536xf32> to vector<1x1536xf32>
    %3 = arith.mulf %1, %1 : vector<1x1536xf32>
    %4 = arith.mulf %2, %2 : vector<1x1536xf32>
    %5 = arith.addf %3, %4 : vector<1x1536xf32>
    %6 = math.rsqrt %5 : vector<1x1536xf32>
    %7 = arith.mulf %5, %6 : vector<1x1536xf32>
    %8 = vector.broadcast %6 : vector<1x1536xf32> to vector<2x1536xf32>
    %9 = arith.mulf %0, %8 : vector<2x1536xf32>
    %cst = arith.constant 2.500000e+00 : f32
    %10 = vector.broadcast %cst : f32 to vector<1x1536xf32>
    %11 = arith.mulf %10, %7 : vector<1x1536xf32>
    %cst_1 = arith.constant 1.250000e+00 : f32
    %12 = vector.broadcast %cst_1 : f32 to vector<1x1536xf32>
    %13 = arith.subf %11, %12 : vector<1x1536xf32>
    %cst_2 = arith.constant 0.000000e+00 : f32
    %cst_3 = arith.constant 1.000000e+00 : f32
    %14 = vector.broadcast %cst_2 : f32 to vector<1x1536xf32>
    %15 = arith.maximumf %14, %13 : vector<1x1536xf32>
    %16 = vector.broadcast %cst_3 : f32 to vector<1x1536xf32>
    %17 = arith.minimumf %16, %15 : vector<1x1536xf32>
    %cst_4 = arith.constant -6.000000e+00 : f32
    %18 = vector.broadcast %cst_4 : f32 to vector<1x1536xf32>
    %19 = arith.mulf %18, %17 : vector<1x1536xf32>
    %cst_5 = arith.constant 1.500000e+01 : f32
    %20 = vector.broadcast %cst_5 : f32 to vector<1x1536xf32>
    %21 = arith.addf %19, %20 : vector<1x1536xf32>
    %22 = arith.mulf %21, %17 : vector<1x1536xf32>
    %cst_6 = arith.constant 1.000000e+01 : f32
    %23 = vector.broadcast %cst_6 : f32 to vector<1x1536xf32>
    %24 = arith.subf %22, %23 : vector<1x1536xf32>
    %25 = arith.mulf %17, %17 : vector<1x1536xf32>
    %26 = arith.mulf %25, %17 : vector<1x1536xf32>
    %27 = arith.mulf %24, %26 : vector<1x1536xf32>
    %cst_7 = arith.constant 1.000000e+00 : f32
    %28 = vector.broadcast %cst_7 : f32 to vector<1x1536xf32>
    %29 = arith.addf %27, %28 : vector<1x1536xf32>
    %c0_8 = arith.constant 0 : index
    %c384 = arith.constant 384 : index
    %30 = vector.load %arg2[%c0_8, %c384] : memref<48x640xf32, #tpu.memory_space<vmem>>, vector<48x8xf32>
    %c0_9 = arith.constant 0 : index
    %c0_10 = arith.constant 0 : index
    %31 = vector.load %arg2[%c0_9, %c0_10] : memref<48x640xf32, #tpu.memory_space<vmem>>, vector<48x48xf32>
    %c0_11 = arith.constant 0 : index
    %c128 = arith.constant 128 : index
    %32 = vector.load %arg2[%c0_11, %c128] : memref<48x640xf32, #tpu.memory_space<vmem>>, vector<48x48xf32>
    %c0_12 = arith.constant 0 : index
    %c256 = arith.constant 256 : index
    %33 = vector.load %arg2[%c0_12, %c256] : memref<48x640xf32, #tpu.memory_space<vmem>>, vector<16x48xf32>
    %c0_13 = arith.constant 0 : index
    %c512 = arith.constant 512 : index
    %34 = vector.load %arg2[%c0_13, %c512] : memref<48x640xf32, #tpu.memory_space<vmem>>, vector<48x1xf32>
    %c0_14 = arith.constant 0 : index
    %c513 = arith.constant 513 : index
    %35 = vector.load %arg2[%c0_14, %c513] : memref<48x640xf32, #tpu.memory_space<vmem>>, vector<48x1xf32>
    %c0_15 = arith.constant 0 : index
    %c514 = arith.constant 514 : index
    %36 = vector.load %arg2[%c0_15, %c514] : memref<48x640xf32, #tpu.memory_space<vmem>>, vector<48x1xf32>
    %c0_16 = arith.constant 0 : index
    %c515 = arith.constant 515 : index
    %37 = vector.load %arg2[%c0_16, %c515] : memref<48x640xf32, #tpu.memory_space<vmem>>, vector<16x1xf32>
    %cst_17 = arith.constant 0.000000e+00 : f32
    %38 = vector.broadcast %cst_17 : f32 to vector<4x1536xf32>
    %39 = tpu.concatenate %0, %9, %38 in 0 : vector<2x1536xf32>, vector<2x1536xf32>, vector<4x1536xf32> -> vector<8x1536xf32>
    %cst_18 = arith.constant dense<0.000000e+00> : vector<48x1536xf32>
    %40 = tpu.matmul %30, %39, %cst_18 {dimension_numbers = #tpu.dot_dimension_numbers<[1], [0], [0], [1], [0, 0, 1, 1], [], []>} : vector<48x8xf32>, vector<8x1536xf32>, vector<48x1536xf32> -> vector<48x1536xf32>
    %41 = vector.broadcast %34 : vector<48x1xf32> to vector<48x1536xf32>
    %42 = arith.addf %40, %41 : vector<48x1536xf32>
    %43 = math.tanh %42 : vector<48x1536xf32>
    %cst_19 = arith.constant dense<0.000000e+00> : vector<48x1536xf32>
    %44 = tpu.matmul %31, %43, %cst_19 {dimension_numbers = #tpu.dot_dimension_numbers<[1], [0], [0], [1], [0, 0, 1, 1], [], []>} : vector<48x48xf32>, vector<48x1536xf32>, vector<48x1536xf32> -> vector<48x1536xf32>
    %45 = vector.broadcast %35 : vector<48x1xf32> to vector<48x1536xf32>
    %46 = arith.addf %44, %45 : vector<48x1536xf32>
    %47 = math.tanh %46 : vector<48x1536xf32>
    %cst_20 = arith.constant dense<0.000000e+00> : vector<48x1536xf32>
    %48 = tpu.matmul %32, %47, %cst_20 {dimension_numbers = #tpu.dot_dimension_numbers<[1], [0], [0], [1], [0, 0, 1, 1], [], []>} : vector<48x48xf32>, vector<48x1536xf32>, vector<48x1536xf32> -> vector<48x1536xf32>
    %49 = vector.broadcast %36 : vector<48x1xf32> to vector<48x1536xf32>
    %50 = arith.addf %48, %49 : vector<48x1536xf32>
    %51 = math.tanh %50 : vector<48x1536xf32>
    %cst_21 = arith.constant dense<0.000000e+00> : vector<16x1536xf32>
    %52 = tpu.matmul %33, %51, %cst_21 {dimension_numbers = #tpu.dot_dimension_numbers<[1], [0], [0], [1], [0, 0, 1, 1], [], []>} : vector<16x48xf32>, vector<48x1536xf32>, vector<16x1536xf32> -> vector<16x1536xf32>
    %53 = vector.broadcast %37 : vector<16x1xf32> to vector<16x1536xf32>
    %54 = arith.addf %52, %53 : vector<16x1536xf32>
    %55 = vector.extract_strided_slice %54 {offsets = [0, 0], sizes = [1, 1536], strides = [1, 1]} : vector<16x1536xf32> to vector<1x1536xf32>
    %56 = vector.extract_strided_slice %54 {offsets = [1, 0], sizes = [1, 1536], strides = [1, 1]} : vector<16x1536xf32> to vector<1x1536xf32>
    %57 = vector.extract_strided_slice %54 {offsets = [2, 0], sizes = [1, 1536], strides = [1, 1]} : vector<16x1536xf32> to vector<1x1536xf32>
    %58 = vector.extract_strided_slice %54 {offsets = [3, 0], sizes = [1, 1536], strides = [1, 1]} : vector<16x1536xf32> to vector<1x1536xf32>
    %59 = vector.extract_strided_slice %54 {offsets = [4, 0], sizes = [1, 1536], strides = [1, 1]} : vector<16x1536xf32> to vector<1x1536xf32>
    %60 = vector.extract_strided_slice %54 {offsets = [5, 0], sizes = [1, 1536], strides = [1, 1]} : vector<16x1536xf32> to vector<1x1536xf32>
    %61 = vector.extract_strided_slice %54 {offsets = [6, 0], sizes = [1, 1536], strides = [1, 1]} : vector<16x1536xf32> to vector<1x1536xf32>
    %62 = vector.extract_strided_slice %54 {offsets = [7, 0], sizes = [1, 1536], strides = [1, 1]} : vector<16x1536xf32> to vector<1x1536xf32>
    %63 = vector.extract_strided_slice %54 {offsets = [8, 0], sizes = [1, 1536], strides = [1, 1]} : vector<16x1536xf32> to vector<1x1536xf32>
    %64 = math.absf %1 : vector<1x1536xf32>
    %65 = math.absf %2 : vector<1x1536xf32>
    %66 = arith.mulf %64, %6 : vector<1x1536xf32>
    %67 = arith.mulf %65, %6 : vector<1x1536xf32>
    %68 = arith.mulf %58, %29 : vector<1x1536xf32>
    %69 = arith.addf %55, %68 : vector<1x1536xf32>
    %70 = arith.mulf %59, %29 : vector<1x1536xf32>
    %71 = arith.addf %56, %70 : vector<1x1536xf32>
    %72 = arith.mulf %71, %64 : vector<1x1536xf32>
    %73 = arith.addf %69, %72 : vector<1x1536xf32>
    %74 = arith.mulf %60, %29 : vector<1x1536xf32>
    %75 = arith.addf %57, %74 : vector<1x1536xf32>
    %76 = arith.mulf %75, %65 : vector<1x1536xf32>
    %77 = arith.addf %73, %76 : vector<1x1536xf32>
    %c0_22 = arith.constant 0 : index
    %78 = memref.load %arg3[%c0_22] : memref<1xf32, #tpu.memory_space<smem>>
    %79 = math.log %7 : vector<1x1536xf32>
    %80 = vector.broadcast %78 : f32 to vector<1x1536xf32>
    %81 = arith.mulf %80, %79 : vector<1x1536xf32>
    %82 = math.exp %81 : vector<1x1536xf32>
    %83 = arith.mulf %62, %66 : vector<1x1536xf32>
    %84 = arith.addf %61, %83 : vector<1x1536xf32>
    %85 = arith.mulf %63, %67 : vector<1x1536xf32>
    %86 = arith.addf %84, %85 : vector<1x1536xf32>
    %87 = arith.mulf %86, %29 : vector<1x1536xf32>
    %88 = arith.mulf %87, %82 : vector<1x1536xf32>
    %89 = arith.addf %77, %88 : vector<1x1536xf32>
    %c0_23 = arith.constant 0 : index
    %c0_24 = arith.constant 0 : index
    %90 = vector.load %arg4[%c0_23, %c0_24] : memref<1x1536xf32, #tpu.memory_space<vmem>>, vector<1x1536xf32>
    tpu.vector_store %arg4[%c0_23, %c0_24], %89 {strides = array<i32>} : memref<1x1536xf32, #tpu.memory_space<vmem>>, vector<1x1536xf32>,
    return
  }
  func.func @transform_0(%arg0: i32) -> (i32, i32) {
    %c0_i32 = arith.constant 0 : i32
    %c0_i32_0 = arith.constant 0 : i32
    return %c0_i32, %arg0 : i32, i32
  }
  func.func @transform_1(%arg0: i32) -> (i32, i32) {
    %c0_i32 = arith.constant 0 : i32
    %c0_i32_0 = arith.constant 0 : i32
    %c0_i32_1 = arith.constant 0 : i32
    return %c0_i32, %c0_i32_0 : i32, i32
  }
  func.func @transform_2(%arg0: i32) -> i32 {
    %c0_i32 = arith.constant 0 : i32
    %c0_i32_0 = arith.constant 0 : i32
    return %c0_i32 : i32
  }
  func.func @transform_3(%arg0: i32) -> (i32, i32) {
    %c0_i32 = arith.constant 0 : i32
    %c0_i32_0 = arith.constant 0 : i32
    return %c0_i32, %arg0 : i32, i32
  }
}

</mosaic_0001>

<bundles_post_ra>
// kernel: _reconn_forward.1
= control target key start
LH: loop header
LB: loop body
LE: loop exit
PB: predicated region body
PF: predicated region fallthrough
CT: control target
= control target key end

     0   :  { %s5058_s14 = smov 0   ;;  %s6494_s0 = inlined_call_operand.vmem [shape: f32[2,3072], index: 0, kind: input, shape index: {}]   ;;  %s6495_s1 = inlined_call_operand.vmem [shape: f32[48,640], index: 1, kind: input, shape index: {}]   ;;  %s6496_s2 = inlined_call_operand.<no memory space> [shape: f32[1], index: 2, kind: input, shape index: {}]   ;;  %s6497_s3 = inlined_call_operand.vmem [shape: f32[1,3072], index: 3, kind: output, shape index: {}]  }
   0x1   :  { %8 = sst [smem:[#allocation2]] %s6496_s2 }
   0x2 LB: > { %s4170_s15 = sadd.s32 4294967295, %s5026_s14   ;;  %p4174_p0 = scmp.ge.s32.totalorder %s5026_s14, 1  ;;  %s5026_s14 = sphi %s5058_s14, %s14_s14  }
   0x3   : > { %p139_p1 = scmp.lt.s32.totalorder %s5026_s14, 3 }
   0x5   : > { %p140_p2 = pnand %p4174_p0, %p139_p1 }
   0x7   : > { %143 = sbr.rel (%p140_p2) target bundleno = 1125 (0x465), region = 32 }
   0xe   : > { %s162_s16 = smul.u32 12, %s4170_s15  ;;  %v5028_v0 = vmov 0.0   ;;  %v5029_v1 = vmov 0   ;;  %v5071_v2 = vld [vmem:[%s6495_s1 + $0x20] sm:$0xff]  ;;  %v5076_v3 = vld [vmem:[%s6495_s1 + $0x70] sm:$0xff]  ;;  %v5085_v4 = vld [vmem:[%s6495_s1 + $0x48] sm:$0xff]  ;;  %v6498_v18 = vlaneseq }
   0xf   : > { %816 = vmatprep.mubr.f32.mxu1 %v5028_v0  ;;  %715 = vmatprep.mubr.f32.mxu0 %v5028_v0  ;;  %v5090_v5 = vld [vmem:[%s6495_s1 + $0x98] sm:$0xff]  ;;  %v5114_v10 = vld [vmem:[%s6495_s1 + $0xc0] sm:$0xff]  ;;  %v5119_v11 = vld [vmem:[%s6495_s1 + $0xe8] sm:$0xff]  ;;  %v5030_v22 = vmov 1983009808   ;;  %vm576_vm0 = vcmask 1041408  }
  0x10   : > { %p163_p3 = scmp.lt.s32.totalorder %s162_s16, 23  ;;  %4550 = vset.pattern.permute.xlu0 %v5029_v1  ;;  %4551 = vset.pattern.permute.xlu1 %v5029_v1  ;;  %v5136_v21 = vshrl.u32 %v6498_v18, 7  ;;  %v326_v23 = vunpack.c.l.s4 %v5030_v22  ;;  %vm589_vm1 = vcmask 1043456   ;;  %vm632_vm2 = vcmask 64512   ;;  %s3629_s11 = sld [smem:[#allocation2]] }
  0x11   : > { %604 = vperm.xlu0 %4550, %v5071_v2   ;;  %614 = vperm.xlu1 %4551, %v5076_v3   ;;  %vm1353_vm3 = vcmask 392192  }
  0x12   : > { %s6551_s16 = smov (!%p163_p3, %s162_s16), 23  ;;  %v5140_v24 = vsub.s32 0, %v5136_v21  ;;  %v5143_v25 = vsub.s32 2, %v5136_v21  ;;  %v5146_v26 = vsub.s32 4, %v5136_v21  ;;  %v5149_v27 = vsub.s32 6, %v5136_v21 }
  0x13   : > { %s4175_s24 = sshll.u32 %s6551_s16, 1  ;;  %v327_v28 = vunpack.c.0.s8 %v326_v23  ;;  %s6454_s13 = scalar_lea.vmem %s6497_s3, %s6551_s16 }
  0x14   : > { %s5096_s27 = scalar_lea.vmem %s6494_s0, %s4175_s24 }
  0x15   : > { %v5099_v6 = vld [vmem:[%s5096_s27] sm:$0xff]  ;;  %v5102_v7 = vld [vmem:[%s5096_s27 + $0x8] sm:$0xff]  ;;  %v5105_v8 = vld [vmem:[%s5096_s27 + $0x10] sm:$0xff]  ;;  %609 = vperm.xlu0 %4550, %v5085_v4   ;;  %619 = vperm.xlu1 %4551, %v5090_v5   ;;  %v5171_v40 = vsub.s32 %v327_v28, %v5136_v21 }
  0x16   : > { %v176_v9 = vmul.f32 %v5099_v6, %v5099_v6  ;;  %v177_v12 = vmul.f32 %v5102_v7, %v5102_v7  ;;  %v178_v14 = vmul.f32 %v5105_v8, %v5105_v8  ;;  %v447_v42 = vcombine.high %v5099_v6, %v5099_v6 }
  0x17   : > { %v464_v57 = vcombine.high %v5102_v7, %v5102_v7  ;;  %v471_v28 = vrot.slane %v5102_v7, %v5171_v40 }
  0x18   : > { %v4176_v13 = vrot.slane %v176_v9, 9  ;;  %v4177_v15 = vrot.slane %v177_v12, 9  ;;  %v4178_v17 = vrot.slane %v178_v14, 9  ;;  %v461_v55 = vrot.slane %v447_v42, %v5171_v40 }
  0x19   : > { %624 = vperm.xlu0 %4550, %v5114_v10   ;;  %629 = vperm.xlu1 %4551, %v5119_v11  }
  0x1a   : > { %v5127_v16 = vadd.f32 %v4176_v13, %v176_v9  ;;  %v5129_v19 = vadd.f32 %v4177_v15, %v177_v12  ;;  %v5133_v20 = vadd.f32 %v4178_v17, %v178_v14  ;;  %v454_v9 = vrot.slane %v5099_v6, %v5171_v40 }
  0x1b   : > { %v463_v23 = vcombine.high %v461_v55, %v461_v55 }
  0x1c   : > { %4561 = vrsqrt.f32 %v5127_v16 }
  0x1d   : > { %4563 = vrsqrt.f32 %v5129_v19 }
  0x1e   : > { %4565 = vrsqrt.f32 %v5133_v20 }
  0x26   : > { %v5151_v29 = vpop.eup %4561 }
  0x27   : > { %v5153_v30 = vpop.eup %4563  ;;  %v206_v31 = vrot.slane %v5151_v29, %v5140_v24  ;;  %v210_v32 = vrot.slane %v5151_v29, %v5143_v25  ;;  %v214_v33 = vrot.slane %v5151_v29, %v5146_v26  ;;  %v218_v34 = vrot.slane %v5151_v29, %v5149_v27 }
  0x28   : > { %v222_v35 = vrot.slane %v5153_v30, %v5140_v24  ;;  %v226_v36 = vrot.slane %v5153_v30, %v5143_v25  ;;  %v230_v43 = vrot.slane %v5153_v30, %v5146_v26  ;;  %v234_v44 = vrot.slane %v5153_v30, %v5149_v27  ;;  %v5182_v48 = vpop.eup %4565 }
  0x29   : > { %v266_v37 = vrot.slane %v206_v31, %v5140_v24  ;;  %v270_v38 = vrot.slane %v210_v32, %v5140_v24  ;;  %v274_v39 = vrot.slane %v214_v33, %v5140_v24  ;;  %v278_v41 = vrot.slane %v218_v34, %v5140_v24 }
  0x2a   : > { %v282_v46 = vrot.slane %v222_v35, %v5140_v24  ;;  %v286_v47 = vrot.slane %v226_v36, %v5140_v24  ;;  %v290_v50 = vrot.slane %v230_v43, %v5140_v24  ;;  %v294_v51 = vrot.slane %v234_v44, %v5140_v24 }
  0x2b   : > { %v323_v45 = vcombine.low %v266_v37, %v270_v38  ;;  %v324_v49 = vcombine.low %v274_v39, %v278_v41  ;;  %v238_v59 = vrot.slane %v5182_v48, %v5140_v24  ;;  %v242_v60 = vrot.slane %v5182_v48, %v5143_v25 }
  0x2c   : > { %v340_v53 = vcombine.low %v282_v46, %v286_v47  ;;  %v341_v56 = vcombine.low %v290_v50, %v294_v51  ;;  %v246_v61 = vrot.slane %v5182_v48, %v5146_v26  ;;  %v250_v1 = vrot.slane %v5182_v48, %v5149_v27 }
  0x2d   : > { %v331_v52 = vrot.slane %v323_v45, %v5171_v40  ;;  %v338_v54 = vrot.slane %v324_v49, %v5171_v40  ;;  %v298_v12 = vrot.slane %v238_v59, %v5140_v24  ;;  %v302_v13 = vrot.slane %v242_v60, %v5140_v24  ;;  %v5224_v49 = vld [vmem:[%s6495_s1 + $0x18] sm:$0xff]  ;;  %v5243_v60 = vld [vmem:[%s6495_s1 + $0x40] sm:$0xff] }
  0x2e   : > { %v348_v58 = vrot.slane %v340_v53, %v5171_v40  ;;  %v355_v63 = vrot.slane %v341_v56, %v5171_v40  ;;  %v306_v14 = vrot.slane %v246_v61, %v5140_v24  ;;  %v310_v22 = vrot.slane %v250_v1, %v5140_v24 }
  0x2f   : > { %v339_v62 = vcombine.low %v331_v52, %v338_v54  ;;  %v478_v31 = vrot.slane %v464_v57, %v5171_v40  ;;  %v357_v32 = vcombine.low %v298_v12, %v302_v13  ;;  %v462_v37 = vcombine.high %v454_v9, %v454_v9 }
  0x30   : > { %v356_v17 = vcombine.low %v348_v58, %v355_v63  ;;  %v358_v36 = vcombine.low %v306_v14, %v310_v22  ;;  %v479_v50 = vcombine.high %v471_v28, %v471_v28  ;;  %v488_v59 = vrot.slane %v5105_v8, %v5171_v40 }
  0x31   : > { %v377_v15 = vmul.f32 %v339_v62, %v5099_v6  ;;  %v481_v6 = vcombine.high %v5105_v8, %v5105_v8  ;;  %v365_v42 = vrot.slane %v357_v32, %v5171_v40  ;;  %v480_v44 = vcombine.high %v478_v31, %v478_v31  ;;  %v421_v32 = vld [vmem:[%s6495_s1 + $0xe0] sm:$0xff] }
  0x32   : > { %v378_v35 = vmul.f32 %v356_v17, %v5102_v7  ;;  %v372_v7 = vrot.slane %v358_v36, %v5171_v40  ;;  %v496_v14 = vcombine.high %v488_v59, %v488_v59 }
  0x33   : > { %v527_v33 = vrot.slane %v377_v15, %v5171_v40  ;;  %v513_v34 = vcombine.low %v377_v15, %v377_v15  ;;  %v495_v57 = vrot.slane %v481_v6, %v5171_v40 }
  0x34   : > { %v530_v41 = vcombine.low %v378_v35, %v378_v35  ;;  %v544_v45 = vrot.slane %v378_v35, %v5171_v40  ;;  %v373_v56 = vcombine.low %v365_v42, %v372_v7  ;;  %v5031_v35 = vmov 1  }
  0x35   : > { %v529_v38 = vcombine.high %v527_v33, %v527_v33  ;;  %v520_v39 = vrot.slane %v513_v34, %v5171_v40  ;;  %v579_v43 = vsel %vm576_vm0, %v461_v55, %v527_v33  ;;  %v497_v12 = vcombine.high %v495_v57, %v495_v57  ;;  %4553 = vset.pattern.permute.xlu1 %v5031_v35 }
  0x36   : > { %v537_v51 = vrot.slane %v530_v41, %v5171_v40  ;;  %v546_v53 = vcombine.high %v544_v45, %v544_v45  ;;  %v379_v63 = vmul.f32 %v373_v56, %v5105_v8  ;;  %v583_v1 = vsel %vm576_vm0, %v478_v31, %v544_v45  ;;  %v5263_v8 = vld [vmem:[%s6495_s1 + $0x68] sm:$0xff]  ;;  %v420_v31 = vld [vmem:[%s6495_s1 + $0xb8] sm:$0xff]  ;;  %4552 = vset.pattern.permute.xlu0 %v5031_v35 }
  0x37   : > { %v580_v46 = vsel %vm576_vm0, %v463_v23, %v529_v38  ;;  %v528_v47 = vcombine.high %v520_v39, %v520_v39  ;;  %v577_v52 = vsel %vm576_vm0, %v454_v9, %v520_v39  ;;  %1334 = vperm.xlu1 %4553, %v5085_v4   ;;  %1330 = vperm.xlu0 %4552, %v5071_v2  }
  0x38   : > { %4193 = vmatprep.subr.msk.mxu1 %vm589_vm1, %v580_v46  ;;  %v545_v55 = vcombine.high %v537_v51, %v537_v51  ;;  %v584_v58 = vsel %vm576_vm0, %v480_v44, %v546_v53  ;;  %v581_v62 = vsel %vm576_vm0, %v471_v28, %v537_v51  ;;  %v547_v9 = vcombine.low %v379_v63, %v379_v63 }
  0x39   : > { %4194 = vmatpush1.msk.msra.mxu1 %vm589_vm1, %v579_v43  ;;  %v578_v54 = vsel %vm576_vm0, %v462_v37, %v528_v47  ;;  %v561_v13 = vrot.slane %v379_v63, %v5171_v40 }
  0x3a   : > { %4185 = vmatprep.subr.msk.mxu0 %vm589_vm1, %v578_v54  ;;  %4195 = vmatmul.mubr.msk.f32.vlgmr.msra.gmra.mrb[0].mxu1 %vm632_vm2, %v5224_v49  ;;  %v582_v61 = vsel %vm576_vm0, %v479_v50, %v545_v55  ;;  %v554_v15 = vrot.slane %v547_v9, %v5171_v40  ;;  %v419_v40 = vld [vmem:[%s6495_s1 + $0x90] sm:$0xff] }
  0x3b   : > { %4186 = vmatpush1.msk.msra.mxu0 %vm589_vm1, %v577_v52  ;;  %822 = vmatprep.mubr.f32.mxu1 %v5028_v0  ;;  %v563_v17 = vcombine.high %v561_v13, %v561_v13  ;;  %v587_v33 = vsel %vm576_vm0, %v495_v57, %v561_v13 }
  0x3c   : > { %4187 = vmatmul.mubr.msk.f32.vlgmr.msra.gmra.mrb[0].mxu0 %vm632_vm2, %v5224_v49  ;;  %4201 = vmatprep.subr.msk.mxu0 %vm589_vm1, %v582_v61  ;;  %v562_v22 = vcombine.high %v554_v15, %v554_v15  ;;  %v585_v34 = vsel %vm576_vm0, %v488_v59, %v554_v15 }
  0x3d   : > { %721 = vmatprep.mubr.f32.mxu0 %v5028_v0  ;;  %4209 = vmatprep.subr.msk.mxu1 %vm589_vm1, %v584_v58  ;;  %v588_v23 = vsel %vm576_vm0, %v497_v12, %v563_v17 }
  0x3e   : > { %4196 = vmatmul.mubr.msk.f32.gmra.mrb[2].mxu1 %vm632_vm2, %v5243_v60  ;;  %4202 = vmatpush1.msk.msra.mxu0 %vm589_vm1, %v581_v62  ;;  %v586_v28 = vsel %vm576_vm0, %v496_v14, %v562_v22 }
  0x3f   : > { %828 = vmatprep.mubr.f32.mxu1 %v5028_v0  ;;  %4210 = vmatpush1.msk.msra.mxu1 %vm589_vm1, %v583_v1 }
  0x40   : > { %4188 = vmatmul.mubr.msk.f32.gmra.mrb[2].mxu0 %vm632_vm2, %v5243_v60  ;;  %4225 = vmatprep.subr.msk.mxu1 %vm589_vm1, %v588_v23 }
  0x41   : > { %727 = vmatprep.mubr.f32.mxu0 %v5028_v0  ;;  %4217 = vmatprep.subr.msk.mxu0 %vm589_vm1, %v586_v28 }
  0x42   : > { %4197 = vmatmul.mubr.msk.f32.gmra.mrb[4].mxu1 %vm632_vm2, %v5263_v8  ;;  %1338 = vperm.xlu1 %4553, %v5076_v3  }
  0x43   : > { %834 = vmatprep.mubr.f32.mxu1 %v5028_v0  ;;  %1342 = vperm.xlu0 %4552, %v5090_v5  }
  0x44   : > { %4189 = vmatmul.mubr.msk.f32.gmra.mrb[4].mxu0 %vm632_vm2, %v5263_v8 }
  0x45   : > { %733 = vmatprep.mubr.f32.mxu0 %v5028_v0 }
  0x46   : > { %4198 = vmatmul.mubr.msk.f32.gmra.mrb[6].mxu1 %vm632_vm2, %v419_v40  ;;  %1346 = vperm.xlu1 %4553, %v5114_v10  }
  0x47   : > { %840 = vmatprep.mubr.f32.mxu1 %v5028_v0  ;;  %1350 = vperm.xlu0 %4552, %v5119_v11  }
  0x48   : > { %4190 = vmatmul.mubr.msk.f32.gmra.mrb[6].mxu0 %vm632_vm2, %v419_v40 }
  0x49   : > { %739 = vmatprep.mubr.f32.mxu0 %v5028_v0 }
  0x4a   : > { %4199 = vmatmul.mubr.msk.f32.gmra.mrb[8].mxu1 %vm632_vm2, %v420_v31 }
  0x4b   : > { %846 = vmatprep.mubr.f32.mxu1 %v5028_v0 }
  0x4c   : > { %4191 = vmatmul.mubr.msk.f32.gmra.mrb[8].mxu0 %vm632_vm2, %v420_v31 }
  0x4d   : > { %745 = vmatprep.mubr.f32.mxu0 %v5028_v0 }
  0x4e   : > { %4200 = vmatmul.mubr.msk.f32.gmra.mrb[10].mxu1 %vm632_vm2, %v421_v32 }
  0x4f   : > { %1018 = vmatprep.mubr.f32.mxu1 %v5028_v0 }
  0x50   : > { %4192 = vmatmul.mubr.msk.f32.gmra.mrb[10].mxu0 %vm632_vm2, %v421_v32 }
  0x51   : > { %917 = vmatprep.mubr.f32.mxu0 %v5028_v0 }
  0x52   : > { %4211 = vmatmul.mubr.msk.f32.vlgmr.msra.gmra.mrb[12].mxu1 %vm632_vm2, %v5224_v49 }
  0x53   : > { %1024 = vmatprep.mubr.f32.mxu1 %v5028_v0  ;;  %4226 = vmatpush1.msk.msra.mxu1 %vm589_vm1, %v587_v33 }
  0x54   : > { %4203 = vmatmul.mubr.msk.f32.vlgmr.msra.gmra.mrb[12].mxu0 %vm632_vm2, %v5224_v49 }
  0x55   : > { %923 = vmatprep.mubr.f32.mxu0 %v5028_v0  ;;  %4218 = vmatpush1.msk.msra.mxu0 %vm589_vm1, %v585_v34 }
  0x56   : > { %4212 = vmatmul.mubr.msk.f32.gmra.mrb[14].mxu1 %vm632_vm2, %v5243_v60 }
  0x57   : > { %1030 = vmatprep.mubr.f32.mxu1 %v5028_v0 }
  0x58   : > { %4204 = vmatmul.mubr.msk.f32.gmra.mrb[14].mxu0 %vm632_vm2, %v5243_v60 }
  0x59   : > { %929 = vmatprep.mubr.f32.mxu0 %v5028_v0 }
  0x5a   : > { %4213 = vmatmul.mubr.msk.f32.gmra.mrb[16].mxu1 %vm632_vm2, %v5263_v8 }
  0x5b   : > { %1036 = vmatprep.mubr.f32.mxu1 %v5028_v0 }
  0x5c   : > { %4205 = vmatmul.mubr.msk.f32.gmra.mrb[16].mxu0 %vm632_vm2, %v5263_v8 }
  0x5d   : > { %935 = vmatprep.mubr.f32.mxu0 %v5028_v0 }
  0x5e   : > { %4214 = vmatmul.mubr.msk.f32.gmra.mrb[18].mxu1 %vm632_vm2, %v419_v40 }
  0x5f   : > { %1042 = vmatprep.mubr.f32.mxu1 %v5028_v0 }
  0x60   : > { %4206 = vmatmul.mubr.msk.f32.gmra.mrb[18].mxu0 %vm632_vm2, %v419_v40 }
  0x61   : > { %941 = vmatprep.mubr.f32.mxu0 %v5028_v0 }
  0x62   : > { %4215 = vmatmul.mubr.msk.f32.gmra.mrb[20].mxu1 %vm632_vm2, %v420_v31 }
  0x63   : > { %1048 = vmatprep.mubr.f32.mxu1 %v5028_v0 }
  0x64   : > { %4207 = vmatmul.mubr.msk.f32.gmra.mrb[20].mxu0 %vm632_vm2, %v420_v31 }
  0x65   : > { %947 = vmatprep.mubr.f32.mxu0 %v5028_v0 }
  0x66   : > { %4216 = vmatmul.mubr.msk.f32.gmra.mrb[22].mxu1 %vm632_vm2, %v421_v32 }
  0x67   : > { %1220 = vmatprep.mubr.f32.mxu1 %v5028_v0 }
  0x68   : > { %4208 = vmatmul.mubr.msk.f32.gmra.mrb[22].mxu0 %vm632_vm2, %v421_v32 }
  0x69   : > { %1119 = vmatprep.mubr.f32.mxu0 %v5028_v0 }
  0x6a   : > { %4227 = vmatmul.mubr.msk.f32.vlgmr.msra.gmra.mrb[24].mxu1 %vm632_vm2, %v5224_v49 }
  0x6b   : > { %1226 = vmatprep.mubr.f32.mxu1 %v5028_v0 }
  0x6c   : > { %4219 = vmatmul.mubr.msk.f32.vlgmr.msra.gmra.mrb[24].mxu0 %vm632_vm2, %v5224_v49 }
  0x6d   : > { %1125 = vmatprep.mubr.f32.mxu0 %v5028_v0 }
  0x6e   : > { %4228 = vmatmul.mubr.msk.f32.gmra.mrb[26].mxu1 %vm632_vm2, %v5243_v60 }
  0x6f   : > { %1232 = vmatprep.mubr.f32.mxu1 %v5028_v0 }
  0x70   : > { %4220 = vmatmul.mubr.msk.f32.gmra.mrb[26].mxu0 %vm632_vm2, %v5243_v60 }
  0x71   : > { %1131 = vmatprep.mubr.f32.mxu0 %v5028_v0 }
  0x72   : > { %4229 = vmatmul.mubr.msk.f32.gmra.mrb[28].mxu1 %vm632_vm2, %v5263_v8 }
  0x73   : > { %1238 = vmatprep.mubr.f32.mxu1 %v5028_v0 }
  0x74   : > { %4221 = vmatmul.mubr.msk.f32.gmra.mrb[28].mxu0 %vm632_vm2, %v5263_v8 }
  0x75   : > { %1137 = vmatprep.mubr.f32.mxu0 %v5028_v0 }
  0x76   : > { %4230 = vmatmul.mubr.msk.f32.gmra.mrb[30].mxu1 %vm632_vm2, %v419_v40 }
  0x77   : > { %1244 = vmatprep.mubr.f32.mxu1 %v5028_v0 }
  0x78   : > { %4222 = vmatmul.mubr.msk.f32.gmra.mrb[30].mxu0 %vm632_vm2, %v419_v40 }
  0x79   : > { %1143 = vmatprep.mubr.f32.mxu0 %v5028_v0 }
  0x7a   : > { %4231 = vmatmul.mubr.msk.f32.gmra.mrb[32].mxu1 %vm632_vm2, %v420_v31 }
  0x7b   : > { %1250 = vmatprep.mubr.f32.mxu1 %v5028_v0 }
  0x7c   : > { %4223 = vmatmul.mubr.msk.f32.gmra.mrb[32].mxu0 %vm632_vm2, %v420_v31 }
  0x7d   : > { %1149 = vmatprep.mubr.f32.mxu0 %v5028_v0 }
  0x7e   : > { %4232 = vmatmul.mubr.msk.f32.gmra.mrb[34].mxu1 %vm632_vm2, %v421_v32 }
  0x7f   : > { %1537 = vmatprep.mubr.f32.mxu1 %v5028_v0 }
  0x80   : > { %4224 = vmatmul.mubr.msk.f32.gmra.mrb[34].mxu0 %vm632_vm2, %v421_v32 }
  0x81   : > { %1436 = vmatprep.mubr.f32.mxu0 %v5028_v0 }
  0x90   : > { %v5370_v36 = vpop.permute.xlu0 %604  ;;  %v5377_v5 = vpop.permute.xlu1 %614 }
  0x94   : > { %v5373_v39 = vpop.permute.xlu0 %609  ;;  %v5385_v52 = vpop.permute.xlu1 %619 }
  0x98   : > { %v5393_v14 = vpop.permute.xlu0 %624 }
 0x10d   : > { %v818_v37 = vpop.f32.mrb[0].mxu1 }
 0x10e   : > { %v819_v6 = vadd.f32 %v818_v37, %v5370_v36  ;;  %v820_v38 = vpop.f32.mrb[1].mxu1 }
 0x10f   : > { %v717_v41 = vpop.f32.mrb[0].mxu0  ;;  %v821_v4 = vadd.f32 %v820_v38, %v5370_v36 }
 0x110   : > { %4567 = vtanh.f32 %v819_v6  ;;  %v718_v2 = vadd.f32 %v717_v41, %v5370_v36  ;;  %v719_v3 = vpop.f32.mrb[1].mxu0  ;;  %v5399_v41 = vpop.permute.xlu1 %629 }
 0x111   : > { %4569 = vtanh.f32 %v821_v4  ;;  %v720_v10 = vadd.f32 %v719_v3, %v5370_v36  ;;  %v824_v11 = vpop.f32.mrb[2].mxu1 }
 0x112   : > { %4571 = vtanh.f32 %v718_v2  ;;  %v825_v42 = vadd.f32 %v824_v11, %v5373_v39  ;;  %v826_v43 = vpop.f32.mrb[3].mxu1 }
 0x113   : > { %4573 = vtanh.f32 %v720_v10  ;;  %v827_v44 = vadd.f32 %v826_v43, %v5373_v39  ;;  %v723_v45 = vpop.f32.mrb[2].mxu0 }
 0x114   : > { %4575 = vtanh.f32 %v825_v42  ;;  %v724_v7 = vadd.f32 %v723_v45, %v5373_v39  ;;  %v725_v46 = vpop.f32.mrb[3].mxu0 }
 0x115   : > { %4577 = vtanh.f32 %v827_v44  ;;  %v726_v47 = vadd.f32 %v725_v46, %v5373_v39  ;;  %v830_v49 = vpop.f32.mrb[4].mxu1 }
 0x116   : > { %4579 = vtanh.f32 %v724_v7  ;;  %v831_v50 = vadd.f32 %v830_v49, %v5377_v5  ;;  %v832_v51 = vpop.f32.mrb[5].mxu1 }
 0x117   : > { %4581 = vtanh.f32 %v726_v47  ;;  %v729_v53 = vpop.f32.mrb[4].mxu0  ;;  %v833_v54 = vadd.f32 %v832_v51, %v5377_v5 }
 0x118   : > { %4583 = vtanh.f32 %v831_v50  ;;  %v730_v55 = vadd.f32 %v729_v53, %v5377_v5  ;;  %v731_v56 = vpop.f32.mrb[5].mxu0 }
 0x119   : > { %4585 = vtanh.f32 %v833_v54  ;;  %v732_v57 = vadd.f32 %v731_v56, %v5377_v5  ;;  %v836_v58 = vpop.f32.mrb[6].mxu1 }
 0x11a   : > { %v4568_v59 = vpop.eup %4567  ;;  %4587 = vtanh.f32 %v730_v55  ;;  %v837_v60 = vadd.f32 %v836_v58, %v5385_v52  ;;  %v838_v61 = vpop.f32.mrb[7].mxu1 }
 0x11b   : > { %v4570_v62 = vpop.eup %4569  ;;  %4589 = vtanh.f32 %v732_v57  ;;  %v839_v63 = vadd.f32 %v838_v61, %v5385_v52  ;;  %v735_v1 = vpop.f32.mrb[6].mxu0 }
 0x11c   : > { %v4572_v9 = vpop.eup %4571  ;;  %4591 = vtanh.f32 %v837_v60  ;;  %v736_v12 = vadd.f32 %v735_v1, %v5385_v52  ;;  %v737_v13 = vpop.f32.mrb[7].mxu0 }
 0x11d   : > { %v4574_v8 = vpop.eup %4573  ;;  %4593 = vtanh.f32 %v839_v63  ;;  %v738_v15 = vadd.f32 %v737_v13, %v5385_v52  ;;  %v842_v17 = vpop.f32.mrb[8].mxu1 }
 0x11e   : > { %v4576_v22 = vpop.eup %4575  ;;  %4595 = vtanh.f32 %v736_v12  ;;  %v843_v23 = vadd.f32 %v842_v17, %v5393_v14  ;;  %v844_v40 = vpop.f32.mrb[9].mxu1 }
 0x11f   : > { %v4578_v28 = vpop.eup %4577  ;;  %4597 = vtanh.f32 %v738_v15  ;;  %v845_v31 = vadd.f32 %v844_v40, %v5393_v14  ;;  %v741_v32 = vpop.f32.mrb[8].mxu0  ;;  %v4333_v33 = vpack.c.bf16 %v4576_v22, %v4568_v59 }
 0x120   : > { %v4580_v34 = vpop.eup %4579  ;;  %4599 = vtanh.f32 %v843_v23  ;;  %v742_v35 = vadd.f32 %v741_v32, %v5393_v14  ;;  %v743_v37 = vpop.f32.mrb[9].mxu0  ;;  %v4331_v6 = vpack.c.bf16 %v4578_v28, %v4570_v62 }
 0x121   : > { %v4582_v38 = vpop.eup %4581  ;;  %4601 = vtanh.f32 %v845_v31  ;;  %v744_v4 = vadd.f32 %v743_v37, %v5393_v14  ;;  %v848_v2 = vpop.f32.mrb[10].mxu1  ;;  %v4321_v3 = vpack.c.bf16 %v4580_v34, %v4572_v9 }
 0x122   : > { %v4584_v10 = vpop.eup %4583  ;;  %4603 = vtanh.f32 %v742_v35  ;;  %v849_v11 = vadd.f32 %v848_v2, %v5399_v41  ;;  %v850_v42 = vpop.f32.mrb[11].mxu1  ;;  %4332 = vmatprep.subr.bf16.mxu1 %v4331_v6  ;;  %v4319_v43 = vpack.c.bf16 %v4582_v38, %v4574_v8 }
 0x123   : > { %v4586_v44 = vpop.eup %4585  ;;  %4605 = vtanh.f32 %v744_v4  ;;  %v851_v45 = vadd.f32 %v850_v42, %v5399_v41  ;;  %v747_v7 = vpop.f32.mrb[10].mxu0  ;;  %4334 = vmatpush1.bf16.msra.mxu1 %v4333_v33 }
 0x124   : > { %v4588_v46 = vpop.eup %4587  ;;  %4607 = vtanh.f32 %v849_v11  ;;  %v748_v47 = vadd.f32 %v747_v7, %v5399_v41  ;;  %v749_v49 = vpop.f32.mrb[11].mxu0  ;;  %4320 = vmatprep.subr.bf16.mxu0 %v4319_v43 }
 0x125   : > { %v4590_v50 = vpop.eup %4589  ;;  %4609 = vtanh.f32 %v851_v45  ;;  %v750_v51 = vadd.f32 %v749_v49, %v5399_v41  ;;  %v1020_v53 = vpop.f32.mrb[12].mxu1  ;;  %4322 = vmatpush1.bf16.msra.mxu0 %v4321_v3 }
 0x126   : > { %v4592_v54 = vpop.eup %4591  ;;  %4611 = vtanh.f32 %v748_v47  ;;  %v1021_v55 = vadd.f32 %v1020_v53, %v5370_v36  ;;  %v1022_v56 = vpop.f32.mrb[13].mxu1 }
 0x127   : > { %v4594_v57 = vpop.eup %4593  ;;  %4613 = vtanh.f32 %v750_v51  ;;  %v1023_v58 = vadd.f32 %v1022_v56, %v5370_v36  ;;  %v919_v59 = vpop.f32.mrb[12].mxu0  ;;  %v4337_v60 = vpack.c.bf16 %v4592_v54, %v4584_v10 }
 0x128   : > { %v4596_v61 = vpop.eup %4595  ;;  %4615 = vtanh.f32 %v1021_v55  ;;  %v920_v62 = vadd.f32 %v919_v59, %v5370_v36  ;;  %v921_v63 = vpop.f32.mrb[13].mxu0  ;;  %v4335_v1 = vpack.c.bf16 %v4594_v57, %v4586_v44  ;;  %v5423_v59 = vld [vmem:[%s6495_s1] sm:$0xff] }
 0x129   : > { %v4598_v9 = vpop.eup %4597  ;;  %4617 = vtanh.f32 %v1023_v58  ;;  %v922_v12 = vadd.f32 %v921_v63, %v5370_v36  ;;  %v1026_v13 = vpop.f32.mrb[14].mxu1  ;;  %v4325_v8 = vpack.c.bf16 %v4596_v61, %v4588_v46 }
 0x12a   : > { %v4600_v15 = vpop.eup %4599  ;;  %4619 = vtanh.f32 %v920_v62  ;;  %v1027_v17 = vadd.f32 %v1026_v13, %v5373_v39  ;;  %v1028_v22 = vpop.f32.mrb[15].mxu1  ;;  %4336 = vmatprep.subr.bf16.mxu1 %v4335_v1  ;;  %v4323_v23 = vpack.c.bf16 %v4598_v9, %v4590_v50 }
 0x12b   : > { %v4602_v40 = vpop.eup %4601  ;;  %4621 = vtanh.f32 %v922_v12  ;;  %v1029_v28 = vadd.f32 %v1028_v22, %v5373_v39  ;;  %v925_v31 = vpop.f32.mrb[14].mxu0  ;;  %4338 = vmatpush1.bf16.msra.mxu1 %v4337_v60 }
 0x12c   : > { %v4604_v32 = vpop.eup %4603  ;;  %4623 = vtanh.f32 %v1027_v17  ;;  %v926_v33 = vadd.f32 %v925_v31, %v5373_v39  ;;  %v927_v34 = vpop.f32.mrb[15].mxu0  ;;  %4324 = vmatprep.subr.bf16.mxu0 %v4323_v23  ;;  %v5435_v23 = vld [vmem:[%s6495_s1 + $0x28] sm:$0xff] }
 0x12d   : > { %v4606_v35 = vpop.eup %4605  ;;  %4625 = vtanh.f32 %v1029_v28  ;;  %v928_v37 = vadd.f32 %v927_v34, %v5373_v39  ;;  %v1032_v6 = vpop.f32.mrb[16].mxu1  ;;  %4326 = vmatpush1.bf16.msra.mxu0 %v4325_v8 }
 0x12e   : > { %v4608_v38 = vpop.eup %4607  ;;  %4627 = vtanh.f32 %v926_v33  ;;  %v1033_v4 = vadd.f32 %v1032_v6, %v5377_v5  ;;  %v1034_v2 = vpop.f32.mrb[17].mxu1 }
 0x12f   : > { %v4610_v3 = vpop.eup %4609  ;;  %4629 = vtanh.f32 %v928_v37  ;;  %v1035_v10 = vadd.f32 %v1034_v2, %v5377_v5  ;;  %v931_v11 = vpop.f32.mrb[16].mxu0  ;;  %v4341_v42 = vpack.c.bf16 %v4608_v38, %v4600_v15 }
 0x130   : > { %v4612_v43 = vpop.eup %4611  ;;  %4631 = vtanh.f32 %v1033_v4  ;;  %v932_v44 = vadd.f32 %v931_v11, %v5377_v5  ;;  %v933_v45 = vpop.f32.mrb[17].mxu0  ;;  %v4339_v7 = vpack.c.bf16 %v4610_v3, %v4602_v40 }
 0x131   : > { %v4614_v46 = vpop.eup %4613  ;;  %4633 = vtanh.f32 %v1035_v10  ;;  %v934_v47 = vadd.f32 %v933_v45, %v5377_v5  ;;  %v1038_v49 = vpop.f32.mrb[18].mxu1  ;;  %v4329_v50 = vpack.c.bf16 %v4612_v43, %v4604_v32  ;;  %v5450_v43 = vld [vmem:[%s6495_s1 + $0x50] sm:$0xff] }
 0x132   : > { %v4616_v51 = vpop.eup %4615  ;;  %4635 = vtanh.f32 %v932_v44  ;;  %v1039_v53 = vadd.f32 %v1038_v49, %v5385_v52  ;;  %v1040_v54 = vpop.f32.mrb[19].mxu1  ;;  %4340 = vmatprep.subr.bf16.mxu1 %v4339_v7  ;;  %v4327_v55 = vpack.c.bf16 %v4614_v46, %v4606_v35 }
 0x133   : > { %v4618_v56 = vpop.eup %4617  ;;  %4637 = vtanh.f32 %v934_v47  ;;  %v1041_v57 = vadd.f32 %v1040_v54, %v5385_v52  ;;  %v937_v58 = vpop.f32.mrb[18].mxu0  ;;  %4342 = vmatpush1.bf16.msra.mxu1 %v4341_v42 }
 0x134   : > { %v4620_v60 = vpop.eup %4619  ;;  %4639 = vtanh.f32 %v1039_v53  ;;  %v938_v61 = vadd.f32 %v937_v58, %v5385_v52  ;;  %v939_v62 = vpop.f32.mrb[19].mxu0  ;;  %4328 = vmatprep.subr.bf16.mxu0 %v4327_v55 }
 0x135   : > { %v4622_v63 = vpop.eup %4621  ;;  %4641 = vtanh.f32 %v1041_v57  ;;  %v940_v1 = vadd.f32 %v939_v62, %v5385_v52  ;;  %v1044_v9 = vpop.f32.mrb[20].mxu1  ;;  %4330 = vmatpush1.bf16.msra.mxu0 %v4329_v50  ;;  %v5465_v57 = vld [vmem:[%s6495_s1 + $0x78] sm:$0xff] }
 0x136   : > { %v4624_v12 = vpop.eup %4623  ;;  %4643 = vtanh.f32 %v938_v61  ;;  %v1045_v13 = vadd.f32 %v1044_v9, %v5393_v14  ;;  %v1046_v8 = vpop.f32.mrb[21].mxu1  ;;  %4239 = vmatmul.mubr.msk.f32.vlgmr.msra.gmra.mrb[36].mxu1 %vm1353_vm3, %v5423_v59 }
 0x137   : > { %v4626_v15 = vpop.eup %4625  ;;  %4645 = vtanh.f32 %v940_v1  ;;  %v1047_v17 = vadd.f32 %v1046_v8, %v5393_v14  ;;  %v943_v22 = vpop.f32.mrb[20].mxu0  ;;  %1543 = vmatprep.mubr.f32.mxu1 %v5028_v0  ;;  %v4357_v40 = vpack.c.bf16 %v4624_v12, %v4616_v51 }
 0x138   : > { %v4628_v28 = vpop.eup %4627  ;;  %4647 = vtanh.f32 %v1045_v13  ;;  %v944_v31 = vadd.f32 %v943_v22, %v5393_v14  ;;  %v945_v32 = vpop.f32.mrb[21].mxu0  ;;  %4233 = vmatmul.mubr.msk.f32.vlgmr.msra.gmra.mrb[36].mxu0 %vm1353_vm3, %v5423_v59  ;;  %v4355_v33 = vpack.c.bf16 %v4626_v15, %v4618_v56 }
 0x139   : > { %v4630_v34 = vpop.eup %4629  ;;  %4649 = vtanh.f32 %v1047_v17  ;;  %v946_v35 = vadd.f32 %v945_v32, %v5393_v14  ;;  %v1050_v37 = vpop.f32.mrb[22].mxu1  ;;  %1442 = vmatprep.mubr.f32.mxu0 %v5028_v0  ;;  %v4345_v6 = vpack.c.bf16 %v4628_v28, %v4620_v60 }
 0x13a   : > { %v4632_v38 = vpop.eup %4631  ;;  %4651 = vtanh.f32 %v944_v31  ;;  %v1051_v4 = vadd.f32 %v1050_v37, %v5399_v41  ;;  %v1052_v2 = vpop.f32.mrb[23].mxu1  ;;  %4240 = vmatmul.mubr.msk.f32.gmra.mrb[38].mxu1 %vm1353_vm3, %v5435_v23  ;;  %4356 = vmatprep.subr.bf16.mxu1 %v4355_v33  ;;  %v4343_v3 = vpack.c.bf16 %v4630_v34, %v4622_v63 }
 0x13b   : > { %v4634_v10 = vpop.eup %4633  ;;  %4653 = vtanh.f32 %v946_v35  ;;  %v1053_v11 = vadd.f32 %v1052_v2, %v5399_v41  ;;  %v949_v42 = vpop.f32.mrb[22].mxu0  ;;  %4358 = vmatpush1.bf16.msra.mxu1 %v4357_v40  ;;  %1549 = vmatprep.mubr.f32.mxu1 %v5028_v0 }
 0x13c   : > { %v4636_v44 = vpop.eup %4635  ;;  %4655 = vtanh.f32 %v1051_v4  ;;  %v950_v45 = vadd.f32 %v949_v42, %v5399_v41  ;;  %v951_v7 = vpop.f32.mrb[23].mxu0  ;;  %4234 = vmatmul.mubr.msk.f32.gmra.mrb[38].mxu0 %vm1353_vm3, %v5435_v23  ;;  %4344 = vmatprep.subr.bf16.mxu0 %v4343_v3 }
 0x13d   : > { %v4638_v46 = vpop.eup %4637  ;;  %4657 = vtanh.f32 %v1053_v11  ;;  %v952_v47 = vadd.f32 %v951_v7, %v5399_v41  ;;  %v1222_v49 = vpop.f32.mrb[24].mxu1  ;;  %4346 = vmatpush1.bf16.msra.mxu0 %v4345_v6  ;;  %1448 = vmatprep.mubr.f32.mxu0 %v5028_v0 }
 0x13e   : > { %v4640_v50 = vpop.eup %4639  ;;  %4659 = vtanh.f32 %v950_v45  ;;  %v1223_v51 = vadd.f32 %v1222_v49, %v5370_v36  ;;  %v1224_v53 = vpop.f32.mrb[25].mxu1  ;;  %4241 = vmatmul.mubr.msk.f32.gmra.mrb[40].mxu1 %vm1353_vm3, %v5450_v43 }
 0x13f   : > { %v4642_v54 = vpop.eup %4641  ;;  %4661 = vtanh.f32 %v952_v47  ;;  %v1225_v55 = vadd.f32 %v1224_v53, %v5370_v36  ;;  %v1121_v56 = vpop.f32.mrb[24].mxu0  ;;  %1555 = vmatprep.mubr.f32.mxu1 %v5028_v0  ;;  %v4361_v58 = vpack.c.bf16 %v4640_v50, %v4632_v38 }
 0x140   : > { %v4644_v60 = vpop.eup %4643  ;;  %4663 = vtanh.f32 %v1223_v51  ;;  %v1122_v61 = vadd.f32 %v1121_v56, %v5370_v36  ;;  %v1123_v62 = vpop.f32.mrb[25].mxu0  ;;  %4235 = vmatmul.mubr.msk.f32.gmra.mrb[40].mxu0 %vm1353_vm3, %v5450_v43  ;;  %v4359_v63 = vpack.c.bf16 %v4642_v54, %v4634_v10 }
 0x141   : > { %v4646_v1 = vpop.eup %4645  ;;  %4665 = vtanh.f32 %v1225_v55  ;;  %v1124_v9 = vadd.f32 %v1123_v62, %v5370_v36  ;;  %v1228_v12 = vpop.f32.mrb[26].mxu1  ;;  %1454 = vmatprep.mubr.f32.mxu0 %v5028_v0  ;;  %v4349_v13 = vpack.c.bf16 %v4644_v60, %v4636_v44  ;;  %v5480_v36 = vld [vmem:[%s6495_s1 + $0xa0] sm:$0xff] }
 0x142   : > { %v4648_v8 = vpop.eup %4647  ;;  %4667 = vtanh.f32 %v1122_v61  ;;  %v1229_v15 = vadd.f32 %v1228_v12, %v5373_v39  ;;  %v1230_v17 = vpop.f32.mrb[27].mxu1  ;;  %4242 = vmatmul.mubr.msk.f32.gmra.mrb[42].mxu1 %vm1353_vm3, %v5465_v57  ;;  %4360 = vmatprep.subr.bf16.mxu1 %v4359_v63  ;;  %v4347_v22 = vpack.c.bf16 %v4646_v1, %v4638_v46 }
 0x143   : > { %v4650_v40 = vpop.eup %4649  ;;  %4669 = vtanh.f32 %v1124_v9  ;;  %v1231_v28 = vadd.f32 %v1230_v17, %v5373_v39  ;;  %v1127_v31 = vpop.f32.mrb[26].mxu0  ;;  %4362 = vmatpush1.bf16.msra.mxu1 %v4361_v58  ;;  %1561 = vmatprep.mubr.f32.mxu1 %v5028_v0 }
 0x144   : > { %v4652_v32 = vpop.eup %4651  ;;  %4671 = vtanh.f32 %v1229_v15  ;;  %v1128_v33 = vadd.f32 %v1127_v31, %v5373_v39  ;;  %v1129_v34 = vpop.f32.mrb[27].mxu0  ;;  %4236 = vmatmul.mubr.msk.f32.gmra.mrb[42].mxu0 %vm1353_vm3, %v5465_v57  ;;  %4348 = vmatprep.subr.bf16.mxu0 %v4347_v22 }
 0x145   : > { %v4654_v35 = vpop.eup %4653  ;;  %4673 = vtanh.f32 %v1231_v28  ;;  %v1130_v37 = vadd.f32 %v1129_v34, %v5373_v39  ;;  %v1234_v6 = vpop.f32.mrb[28].mxu1  ;;  %4350 = vmatpush1.bf16.msra.mxu0 %v4349_v13  ;;  %1460 = vmatprep.mubr.f32.mxu0 %v5028_v0  ;;  %v5495_v39 = vld [vmem:[%s6495_s1 + $0xc8] sm:$0xff] }
 0x146   : > { %v4656_v38 = vpop.eup %4655  ;;  %4675 = vtanh.f32 %v1128_v33  ;;  %v1235_v4 = vadd.f32 %v1234_v6, %v5377_v5  ;;  %v1236_v2 = vpop.f32.mrb[29].mxu1  ;;  %4243 = vmatmul.mubr.msk.f32.gmra.mrb[44].mxu1 %vm1353_vm3, %v5480_v36 }
 0x147   : > { %v4658_v3 = vpop.eup %4657  ;;  %4677 = vtanh.f32 %v1130_v37  ;;  %v1237_v10 = vadd.f32 %v1236_v2, %v5377_v5  ;;  %v1133_v11 = vpop.f32.mrb[28].mxu0  ;;  %1567 = vmatprep.mubr.f32.mxu1 %v5028_v0  ;;  %v4365_v42 = vpack.c.bf16 %v4656_v38, %v4648_v8 }
 0x148   : > { %v4660_v44 = vpop.eup %4659  ;;  %4679 = vtanh.f32 %v1235_v4  ;;  %v1134_v45 = vadd.f32 %v1133_v11, %v5377_v5  ;;  %v1135_v7 = vpop.f32.mrb[29].mxu0  ;;  %4237 = vmatmul.mubr.msk.f32.gmra.mrb[44].mxu0 %vm1353_vm3, %v5480_v36  ;;  %v4363_v46 = vpack.c.bf16 %v4658_v3, %v4650_v40 }
 0x149   : > { %v4662_v47 = vpop.eup %4661  ;;  %4681 = vtanh.f32 %v1237_v10  ;;  %v1136_v49 = vadd.f32 %v1135_v7, %v5377_v5  ;;  %v1240_v50 = vpop.f32.mrb[30].mxu1  ;;  %1466 = vmatprep.mubr.f32.mxu0 %v5028_v0  ;;  %v4353_v51 = vpack.c.bf16 %v4660_v44, %v4652_v32 }
 0x14a   : > { %v4664_v53 = vpop.eup %4663  ;;  %4683 = vtanh.f32 %v1134_v45  ;;  %v1241_v54 = vadd.f32 %v1240_v50, %v5385_v52  ;;  %v1242_v55 = vpop.f32.mrb[31].mxu1  ;;  %4244 = vmatmul.mubr.msk.f32.gmra.mrb[46].mxu1 %vm1353_vm3, %v5495_v39  ;;  %4364 = vmatprep.subr.bf16.mxu1 %v4363_v46  ;;  %v4351_v56 = vpack.c.bf16 %v4662_v47, %v4654_v35 }
 0x14b   : > { %v4666_v58 = vpop.eup %4665  ;;  %4685 = vtanh.f32 %v1136_v49  ;;  %v1243_v60 = vadd.f32 %v1242_v55, %v5385_v52  ;;  %v1139_v61 = vpop.f32.mrb[30].mxu0  ;;  %4366 = vmatpush1.bf16.msra.mxu1 %v4365_v42  ;;  %1739 = vmatprep.mubr.f32.mxu1 %v5028_v0 }
 0x14c   : > { %v4668_v5 = vpop.eup %4667  ;;  %4687 = vtanh.f32 %v1241_v54  ;;  %v1140_v62 = vadd.f32 %v1139_v61, %v5385_v52  ;;  %v1141_v63 = vpop.f32.mrb[31].mxu0  ;;  %4238 = vmatmul.mubr.msk.f32.gmra.mrb[46].mxu0 %vm1353_vm3, %v5495_v39  ;;  %4352 = vmatprep.subr.bf16.mxu0 %v4351_v56 }
 0x14d   : > { %v4670_v1 = vpop.eup %4669  ;;  %4689 = vtanh.f32 %v1243_v60  ;;  %v1142_v9 = vadd.f32 %v1141_v63, %v5385_v52  ;;  %v1246_v12 = vpop.f32.mrb[32].mxu1  ;;  %4354 = vmatpush1.bf16.msra.mxu0 %v4353_v51  ;;  %1638 = vmatprep.mubr.f32.mxu0 %v5028_v0 }
 0x14e   : > { %v4672_v13 = vpop.eup %4671  ;;  %4691 = vtanh.f32 %v1140_v62  ;;  %v1247_v8 = vadd.f32 %v1246_v12, %v5393_v14  ;;  %v1248_v15 = vpop.f32.mrb[33].mxu1  ;;  %4251 = vmatmul.mubr.msk.f32.vlgmr.msra.gmra.mrb[48].mxu1 %vm1353_vm3, %v5423_v59 }
 0x14f   : > { %v4674_v17 = vpop.eup %4673  ;;  %4693 = vtanh.f32 %v1142_v9  ;;  %v1249_v22 = vadd.f32 %v1248_v15, %v5393_v14  ;;  %v1145_v40 = vpop.f32.mrb[32].mxu0  ;;  %1745 = vmatprep.mubr.f32.mxu1 %v5028_v0  ;;  %v4381_v52 = vpack.c.bf16 %v4672_v13, %v4664_v53  ;;  %v5016_v15 = vld [vmem:[%s6495_s1 + $0xe8] sm:$0xff] }
 0x150   : > { %v4676_v28 = vpop.eup %4675  ;;  %4695 = vtanh.f32 %v1247_v8  ;;  %v1146_v31 = vadd.f32 %v1145_v40, %v5393_v14  ;;  %v1147_v32 = vpop.f32.mrb[33].mxu0  ;;  %4245 = vmatmul.mubr.msk.f32.vlgmr.msra.gmra.mrb[48].mxu0 %vm1353_vm3, %v5423_v59  ;;  %v4379_v33 = vpack.c.bf16 %v4674_v17, %v4666_v58 }
 0x151   : > { %v4678_v34 = vpop.eup %4677  ;;  %4697 = vtanh.f32 %v1249_v22  ;;  %v1148_v35 = vadd.f32 %v1147_v32, %v5393_v14  ;;  %v1252_v37 = vpop.f32.mrb[34].mxu1  ;;  %1644 = vmatprep.mubr.f32.mxu0 %v5028_v0  ;;  %v4369_v6 = vpack.c.bf16 %v4676_v28, %v4668_v5 }
 0x152   : > { %v4680_v38 = vpop.eup %4679  ;;  %4699 = vtanh.f32 %v1146_v31  ;;  %v1253_v4 = vadd.f32 %v1252_v37, %v5399_v41  ;;  %v1254_v2 = vpop.f32.mrb[35].mxu1  ;;  %4252 = vmatmul.mubr.msk.f32.gmra.mrb[50].mxu1 %vm1353_vm3, %v5435_v23  ;;  %4380 = vmatprep.subr.bf16.mxu1 %v4379_v33  ;;  %v4367_v3 = vpack.c.bf16 %v4678_v34, %v4670_v1 }
 0x153   : > { %v4682_v10 = vpop.eup %4681  ;;  %4701 = vtanh.f32 %v1148_v35  ;;  %v1255_v11 = vadd.f32 %v1254_v2, %v5399_v41  ;;  %v1151_v42 = vpop.f32.mrb[34].mxu0  ;;  %4382 = vmatpush1.bf16.msra.mxu1 %v4381_v52  ;;  %1751 = vmatprep.mubr.f32.mxu1 %v5028_v0 }
 0x154   : > { %v4684_v14 = vpop.eup %4683  ;;  %4703 = vtanh.f32 %v1253_v4  ;;  %v1152_v44 = vadd.f32 %v1151_v42, %v5399_v41  ;;  %v1153_v45 = vpop.f32.mrb[35].mxu0  ;;  %4246 = vmatmul.mubr.msk.f32.gmra.mrb[50].mxu0 %vm1353_vm3, %v5435_v23  ;;  %4368 = vmatprep.subr.bf16.mxu0 %v4367_v3 }
 0x155   : > { %v4686_v7 = vpop.eup %4685  ;;  %4705 = vtanh.f32 %v1255_v11  ;;  %v1154_v46 = vadd.f32 %v1153_v45, %v5399_v41  ;;  %4370 = vmatpush1.bf16.msra.mxu0 %v4369_v6  ;;  %1650 = vmatprep.mubr.f32.mxu0 %v5028_v0  ;;  %v5610_v17 = vpop.permute.xlu0 %1330 }
 0x156   : > { %v4688_v47 = vpop.eup %4687  ;;  %4707 = vtanh.f32 %v1152_v44  ;;  %4253 = vmatmul.mubr.msk.f32.gmra.mrb[52].mxu1 %vm1353_vm3, %v5450_v43  ;;  %v5613_v28 = vpop.permute.xlu1 %1334 }
 0x157   : > { %v4690_v49 = vpop.eup %4689  ;;  %4709 = vtanh.f32 %v1154_v46  ;;  %1757 = vmatprep.mubr.f32.mxu1 %v5028_v0  ;;  %v4385_v50 = vpack.c.bf16 %v4688_v47, %v4680_v38 }
 0x158   : > { %v4692_v51 = vpop.eup %4691  ;;  %4247 = vmatmul.mubr.msk.f32.gmra.mrb[52].mxu0 %vm1353_vm3, %v5450_v43  ;;  %v4383_v53 = vpack.c.bf16 %v4690_v49, %v4682_v10 }
 0x159   : > { %v4694_v54 = vpop.eup %4693  ;;  %1656 = vmatprep.mubr.f32.mxu0 %v5028_v0  ;;  %v4373_v41 = vpack.c.bf16 %v4692_v51, %v4684_v14 }
 0x15a   : > { %v4696_v55 = vpop.eup %4695  ;;  %4254 = vmatmul.mubr.msk.f32.gmra.mrb[54].mxu1 %vm1353_vm3, %v5465_v57  ;;  %4384 = vmatprep.subr.bf16.mxu1 %v4383_v53  ;;  %v4371_v56 = vpack.c.bf16 %v4694_v54, %v4686_v7  ;;  %v5619_v4 = vpop.permute.xlu1 %1338 }
 0x15b   : > { %v4698_v58 = vpop.eup %4697  ;;  %4386 = vmatpush1.bf16.msra.mxu1 %v4385_v50  ;;  %1763 = vmatprep.mubr.f32.mxu1 %v5028_v0  ;;  %v5625_v7 = vpop.permute.xlu0 %1342 }
 0x15c   : > { %v4700_v60 = vpop.eup %4699  ;;  %4248 = vmatmul.mubr.msk.f32.gmra.mrb[54].mxu0 %vm1353_vm3, %v5465_v57  ;;  %4372 = vmatprep.subr.bf16.mxu0 %v4371_v56 }
 0x15d   : > { %v4702_v61 = vpop.eup %4701  ;;  %4374 = vmatpush1.bf16.msra.mxu0 %v4373_v41  ;;  %1662 = vmatprep.mubr.f32.mxu0 %v5028_v0 }
 0x15e   : > { %v4704_v5 = vpop.eup %4703  ;;  %4255 = vmatmul.mubr.msk.f32.gmra.mrb[56].mxu1 %vm1353_vm3, %v5480_v36 }
 0x15f   : > { %v4706_v62 = vpop.eup %4705  ;;  %1769 = vmatprep.mubr.f32.mxu1 %v5028_v0  ;;  %v4389_v63 = vpack.c.bf16 %v4704_v5, %v4696_v55 }
 0x160   : > { %v4708_v1 = vpop.eup %4707  ;;  %4249 = vmatmul.mubr.msk.f32.gmra.mrb[56].mxu0 %vm1353_vm3, %v5480_v36  ;;  %v4387_v9 = vpack.c.bf16 %v4706_v62, %v4698_v58  ;;  %v5631_v58 = vpop.permute.xlu1 %1346 }
 0x161   : > { %v4710_v12 = vpop.eup %4709  ;;  %1668 = vmatprep.mubr.f32.mxu0 %v5028_v0  ;;  %v4377_v13 = vpack.c.bf16 %v4708_v1, %v4700_v60 }
 0x162   : > { %4256 = vmatmul.mubr.msk.f32.gmra.mrb[58].mxu1 %vm1353_vm3, %v5495_v39  ;;  %4388 = vmatprep.subr.bf16.mxu1 %v4387_v9  ;;  %v4375_v8 = vpack.c.bf16 %v4710_v12, %v4702_v61 }
 0x163   : > { %4390 = vmatpush1.bf16.msra.mxu1 %v4389_v63  ;;  %1941 = vmatprep.mubr.f32.mxu1 %v5028_v0 }
 0x164   : > { %4250 = vmatmul.mubr.msk.f32.gmra.mrb[58].mxu0 %vm1353_vm3, %v5495_v39  ;;  %4376 = vmatprep.subr.bf16.mxu0 %v4375_v8 }
 0x165   : > { %4378 = vmatpush1.bf16.msra.mxu0 %v4377_v13  ;;  %1840 = vmatprep.mubr.f32.mxu0 %v5028_v0 }
 0x166   : > { %4263 = vmatmul.mubr.msk.f32.vlgmr.msra.gmra.mrb[60].mxu1 %vm1353_vm3, %v5423_v59 }
 0x167   : > { %1947 = vmatprep.mubr.f32.mxu1 %v5028_v0 }
 0x168   : > { %4257 = vmatmul.mubr.msk.f32.vlgmr.msra.gmra.mrb[60].mxu0 %vm1353_vm3, %v5423_v59  ;;  %v5032_v59 = vmov 2  }
 0x169   : > { %1846 = vmatprep.mubr.f32.mxu0 %v5028_v0  ;;  %4554 = vset.pattern.permute.xlu1 %v5032_v59 }
 0x16a   : > { %4264 = vmatmul.mubr.msk.f32.gmra.mrb[62].mxu1 %vm1353_vm3, %v5435_v23  ;;  %4555 = vset.pattern.permute.xlu0 %v5032_v59 }
 0x16b   : > { %1953 = vmatprep.mubr.f32.mxu1 %v5028_v0 }
 0x16c   : > { %4258 = vmatmul.mubr.msk.f32.gmra.mrb[62].mxu0 %vm1353_vm3, %v5435_v23  ;;  %v5011_v23 = vld [vmem:[%s6495_s1 + $0x20] sm:$0xff] }
 0x16d   : > { %1852 = vmatprep.mubr.f32.mxu0 %v5028_v0  ;;  %2051 = vperm.xlu1 %4554, %v5011_v23  }
 0x16e   : > { %4265 = vmatmul.mubr.msk.f32.gmra.mrb[64].mxu1 %vm1353_vm3, %v5450_v43 }
 0x16f   : > { %1959 = vmatprep.mubr.f32.mxu1 %v5028_v0 }
 0x170   : > { %4259 = vmatmul.mubr.msk.f32.gmra.mrb[64].mxu0 %vm1353_vm3, %v5450_v43  ;;  %v5012_v43 = vld [vmem:[%s6495_s1 + $0x48] sm:$0xff] }
 0x171   : > { %1858 = vmatprep.mubr.f32.mxu0 %v5028_v0  ;;  %2055 = vperm.xlu0 %4555, %v5012_v43  }
 0x172   : > { %4266 = vmatmul.mubr.msk.f32.gmra.mrb[66].mxu1 %vm1353_vm3, %v5465_v57 }
 0x173   : > { %1965 = vmatprep.mubr.f32.mxu1 %v5028_v0 }
 0x174   : > { %4260 = vmatmul.mubr.msk.f32.gmra.mrb[66].mxu0 %vm1353_vm3, %v5465_v57  ;;  %v5013_v57 = vld [vmem:[%s6495_s1 + $0x70] sm:$0xff] }
 0x175   : > { %1864 = vmatprep.mubr.f32.mxu0 %v5028_v0  ;;  %2059 = vperm.xlu1 %4554, %v5013_v57  }
 0x176   : > { %4267 = vmatmul.mubr.msk.f32.gmra.mrb[68].mxu1 %vm1353_vm3, %v5480_v36 }
 0x177   : > { %1971 = vmatprep.mubr.f32.mxu1 %v5028_v0 }
 0x178   : > { %4261 = vmatmul.mubr.msk.f32.gmra.mrb[68].mxu0 %vm1353_vm3, %v5480_v36  ;;  %v5014_v36 = vld [vmem:[%s6495_s1 + $0xc0] sm:$0xff] }
 0x179   : > { %1870 = vmatprep.mubr.f32.mxu0 %v5028_v0  ;;  %2067 = vperm.xlu0 %4555, %v5014_v36  }
 0x17a   : > { %4268 = vmatmul.mubr.msk.f32.gmra.mrb[70].mxu1 %vm1353_vm3, %v5495_v39 }
 0x17b   : > { %2257 = vmatprep.mubr.f32.mxu1 %v5028_v0 }
 0x17c   : > { %4262 = vmatmul.mubr.msk.f32.gmra.mrb[70].mxu0 %vm1353_vm3, %v5495_v39  ;;  %v5015_v39 = vld [vmem:[%s6495_s1 + $0x98] sm:$0xff] }
 0x17d   : > { %2156 = vmatprep.mubr.f32.mxu0 %v5028_v0  ;;  %2063 = vperm.xlu1 %4554, %v5015_v39  }
 0x181   : > { %2071 = vperm.xlu1 %4554, %v5016_v15  }
 0x209   : > { %v1539_v22 = vpop.f32.mrb[36].mxu1 }
 0x20a   : > { %v1540_v40 = vadd.f32 %v1539_v22, %v5610_v17  ;;  %v1541_v52 = vpop.f32.mrb[37].mxu1 }
 0x20b   : > { %v1438_v31 = vpop.f32.mrb[36].mxu0  ;;  %v1542_v32 = vadd.f32 %v1541_v52, %v5610_v17 }
 0x20c   : > { %4711 = vtanh.f32 %v1540_v40  ;;  %v1439_v33 = vadd.f32 %v1438_v31, %v5610_v17  ;;  %v1440_v34 = vpop.f32.mrb[37].mxu0  ;;  %v5639_v31 = vpop.permute.xlu0 %1350 }
 0x20d   : > { %4713 = vtanh.f32 %v1542_v32  ;;  %v1441_v35 = vadd.f32 %v1440_v34, %v5610_v17  ;;  %v1545_v37 = vpop.f32.mrb[38].mxu1 }
 0x20e   : > { %4715 = vtanh.f32 %v1439_v33  ;;  %v1546_v6 = vadd.f32 %v1545_v37, %v5613_v28  ;;  %v1547_v38 = vpop.f32.mrb[39].mxu1 }
 0x20f   : > { %4717 = vtanh.f32 %v1441_v35  ;;  %v1548_v2 = vadd.f32 %v1547_v38, %v5613_v28  ;;  %v1444_v3 = vpop.f32.mrb[38].mxu0 }
 0x210   : > { %4719 = vtanh.f32 %v1546_v6  ;;  %v1445_v10 = vadd.f32 %v1444_v3, %v5613_v28  ;;  %v1446_v11 = vpop.f32.mrb[39].mxu0 }
 0x211   : > { %4721 = vtanh.f32 %v1548_v2  ;;  %v1447_v42 = vadd.f32 %v1446_v11, %v5613_v28  ;;  %v1551_v14 = vpop.f32.mrb[40].mxu1 }
 0x212   : > { %4723 = vtanh.f32 %v1445_v10  ;;  %v1552_v44 = vadd.f32 %v1551_v14, %v5619_v4  ;;  %v1553_v45 = vpop.f32.mrb[41].mxu1 }
 0x213   : > { %4725 = vtanh.f32 %v1447_v42  ;;  %v1554_v46 = vadd.f32 %v1553_v45, %v5619_v4  ;;  %v1450_v47 = vpop.f32.mrb[40].mxu0 }
 0x214   : > { %4727 = vtanh.f32 %v1552_v44  ;;  %v1451_v49 = vadd.f32 %v1450_v47, %v5619_v4  ;;  %v1452_v50 = vpop.f32.mrb[41].mxu0 }
 0x215   : > { %4729 = vtanh.f32 %v1554_v46  ;;  %v1453_v51 = vadd.f32 %v1452_v50, %v5619_v4  ;;  %v1557_v53 = vpop.f32.mrb[42].mxu1 }
 0x216   : > { %v4712_v54 = vpop.eup %4711  ;;  %4731 = vtanh.f32 %v1451_v49  ;;  %v1558_v41 = vadd.f32 %v1557_v53, %v5625_v7  ;;  %v1559_v55 = vpop.f32.mrb[43].mxu1 }
 0x217   : > { %v4714_v56 = vpop.eup %4713  ;;  %4733 = vtanh.f32 %v1453_v51  ;;  %v1560_v60 = vadd.f32 %v1559_v55, %v5625_v7  ;;  %v1456_v61 = vpop.f32.mrb[42].mxu0 }
 0x218   : > { %v4716_v5 = vpop.eup %4715  ;;  %4735 = vtanh.f32 %v1558_v41  ;;  %v1457_v62 = vadd.f32 %v1456_v61, %v5625_v7  ;;  %v1458_v63 = vpop.f32.mrb[43].mxu0 }
 0x219   : > { %v4718_v1 = vpop.eup %4717  ;;  %4737 = vtanh.f32 %v1560_v60  ;;  %v1459_v9 = vadd.f32 %v1458_v63, %v5625_v7  ;;  %v1563_v12 = vpop.f32.mrb[44].mxu1 }
 0x21a   : > { %v4720_v13 = vpop.eup %4719  ;;  %4739 = vtanh.f32 %v1457_v62  ;;  %v1564_v8 = vadd.f32 %v1563_v12, %v5631_v58  ;;  %v1565_v59 = vpop.f32.mrb[45].mxu1 }
 0x21b   : > { %v4722_v23 = vpop.eup %4721  ;;  %4741 = vtanh.f32 %v1459_v9  ;;  %v1566_v43 = vadd.f32 %v1565_v59, %v5631_v58  ;;  %v1462_v57 = vpop.f32.mrb[44].mxu0  ;;  %v4405_v36 = vpack.c.bf16 %v4720_v13, %v4712_v54 }
 0x21c   : > { %v4724_v39 = vpop.eup %4723  ;;  %4743 = vtanh.f32 %v1564_v8  ;;  %v1463_v15 = vadd.f32 %v1462_v57, %v5631_v58  ;;  %v1464_v22 = vpop.f32.mrb[45].mxu0  ;;  %v4403_v40 = vpack.c.bf16 %v4722_v23, %v4714_v56 }
 0x21d   : > { %v4726_v52 = vpop.eup %4725  ;;  %4745 = vtanh.f32 %v1566_v43  ;;  %v1465_v32 = vadd.f32 %v1464_v22, %v5631_v58  ;;  %v1569_v33 = vpop.f32.mrb[46].mxu1  ;;  %v4393_v34 = vpack.c.bf16 %v4724_v39, %v4716_v5 }
 0x21e   : > { %v4728_v35 = vpop.eup %4727  ;;  %4747 = vtanh.f32 %v1463_v15  ;;  %v1570_v37 = vadd.f32 %v1569_v33, %v5639_v31  ;;  %v1571_v6 = vpop.f32.mrb[47].mxu1  ;;  %4404 = vmatprep.subr.bf16.mxu1 %v4403_v40  ;;  %v4391_v38 = vpack.c.bf16 %v4726_v52, %v4718_v1 }
 0x21f   : > { %v4730_v2 = vpop.eup %4729  ;;  %4749 = vtanh.f32 %v1465_v32  ;;  %v1572_v3 = vadd.f32 %v1571_v6, %v5639_v31  ;;  %v1468_v10 = vpop.f32.mrb[46].mxu0  ;;  %4406 = vmatpush1.bf16.msra.mxu1 %v4405_v36 }
 0x220   : > { %v4732_v11 = vpop.eup %4731  ;;  %4751 = vtanh.f32 %v1570_v37  ;;  %v1469_v42 = vadd.f32 %v1468_v10, %v5639_v31  ;;  %v1470_v14 = vpop.f32.mrb[47].mxu0  ;;  %4392 = vmatprep.subr.bf16.mxu0 %v4391_v38 }
 0x221   : > { %v4734_v44 = vpop.eup %4733  ;;  %4753 = vtanh.f32 %v1572_v3  ;;  %v1471_v45 = vadd.f32 %v1470_v14, %v5639_v31  ;;  %v1741_v46 = vpop.f32.mrb[48].mxu1  ;;  %4394 = vmatpush1.bf16.msra.mxu0 %v4393_v34 }
 0x222   : > { %v4736_v47 = vpop.eup %4735  ;;  %4755 = vtanh.f32 %v1469_v42  ;;  %v1742_v49 = vadd.f32 %v1741_v46, %v5610_v17  ;;  %v1743_v50 = vpop.f32.mrb[49].mxu1 }
 0x223   : > { %v4738_v51 = vpop.eup %4737  ;;  %4757 = vtanh.f32 %v1471_v45  ;;  %v1744_v53 = vadd.f32 %v1743_v50, %v5610_v17  ;;  %v1640_v54 = vpop.f32.mrb[48].mxu0  ;;  %v4409_v41 = vpack.c.bf16 %v4736_v47, %v4728_v35 }
 0x224   : > { %v4740_v55 = vpop.eup %4739  ;;  %4759 = vtanh.f32 %v1742_v49  ;;  %v1641_v56 = vadd.f32 %v1640_v54, %v5610_v17  ;;  %v1642_v60 = vpop.f32.mrb[49].mxu0  ;;  %v4407_v61 = vpack.c.bf16 %v4738_v51, %v4730_v2  ;;  %v5663_v54 = vld [vmem:[%s6495_s1 + $0x8] sm:$0xff] }
 0x225   : > { %v4742_v5 = vpop.eup %4741  ;;  %4761 = vtanh.f32 %v1744_v53  ;;  %v1643_v62 = vadd.f32 %v1642_v60, %v5610_v17  ;;  %v1747_v63 = vpop.f32.mrb[50].mxu1  ;;  %v4397_v1 = vpack.c.bf16 %v4740_v55, %v4732_v11 }
 0x226   : > { %v4744_v9 = vpop.eup %4743  ;;  %4763 = vtanh.f32 %v1641_v56  ;;  %v1748_v12 = vadd.f32 %v1747_v63, %v5613_v28  ;;  %v1749_v13 = vpop.f32.mrb[51].mxu1  ;;  %4408 = vmatprep.subr.bf16.mxu1 %v4407_v61  ;;  %v4395_v8 = vpack.c.bf16 %v4742_v5, %v4734_v44 }
 0x227   : > { %v4746_v59 = vpop.eup %4745  ;;  %4765 = vtanh.f32 %v1643_v62  ;;  %v1750_v23 = vadd.f32 %v1749_v13, %v5613_v28  ;;  %v1646_v43 = vpop.f32.mrb[50].mxu0  ;;  %4410 = vmatpush1.bf16.msra.mxu1 %v4409_v41 }
 0x228   : > { %v4748_v57 = vpop.eup %4747  ;;  %4767 = vtanh.f32 %v1748_v12  ;;  %v1647_v36 = vadd.f32 %v1646_v43, %v5613_v28  ;;  %v1648_v39 = vpop.f32.mrb[51].mxu0  ;;  %4396 = vmatprep.subr.bf16.mxu0 %v4395_v8  ;;  %v5675_v8 = vld [vmem:[%s6495_s1 + $0x30] sm:$0xff] }
 0x229   : > { %v4750_v15 = vpop.eup %4749  ;;  %4769 = vtanh.f32 %v1750_v23  ;;  %v1649_v22 = vadd.f32 %v1648_v39, %v5613_v28  ;;  %v1753_v40 = vpop.f32.mrb[52].mxu1  ;;  %4398 = vmatpush1.bf16.msra.mxu0 %v4397_v1 }
 0x22a   : > { %v4752_v52 = vpop.eup %4751  ;;  %4771 = vtanh.f32 %v1647_v36  ;;  %v1754_v32 = vadd.f32 %v1753_v40, %v5619_v4  ;;  %v1755_v33 = vpop.f32.mrb[53].mxu1 }
 0x22b   : > { %v4754_v34 = vpop.eup %4753  ;;  %4773 = vtanh.f32 %v1649_v22  ;;  %v1756_v35 = vadd.f32 %v1755_v33, %v5619_v4  ;;  %v1652_v37 = vpop.f32.mrb[52].mxu0  ;;  %v4413_v6 = vpack.c.bf16 %v4752_v52, %v4744_v9 }
 0x22c   : > { %v4756_v38 = vpop.eup %4755  ;;  %4775 = vtanh.f32 %v1754_v32  ;;  %v1653_v2 = vadd.f32 %v1652_v37, %v5619_v4  ;;  %v1654_v3 = vpop.f32.mrb[53].mxu0  ;;  %v4411_v10 = vpack.c.bf16 %v4754_v34, %v4746_v59 }
 0x22d   : > { %v4758_v11 = vpop.eup %4757  ;;  %4777 = vtanh.f32 %v1756_v35  ;;  %v1655_v42 = vadd.f32 %v1654_v3, %v5619_v4  ;;  %v1759_v14 = vpop.f32.mrb[54].mxu1  ;;  %v4401_v44 = vpack.c.bf16 %v4756_v38, %v4748_v57  ;;  %v5690_v38 = vld [vmem:[%s6495_s1 + $0x58] sm:$0xff] }
 0x22e   : > { %v4760_v45 = vpop.eup %4759  ;;  %4779 = vtanh.f32 %v1653_v2  ;;  %v1760_v46 = vadd.f32 %v1759_v14, %v5625_v7  ;;  %v1761_v47 = vpop.f32.mrb[55].mxu1  ;;  %4412 = vmatprep.subr.bf16.mxu1 %v4411_v10  ;;  %v4399_v49 = vpack.c.bf16 %v4758_v11, %v4750_v15 }
 0x22f   : > { %v4762_v50 = vpop.eup %4761  ;;  %4781 = vtanh.f32 %v1655_v42  ;;  %v1762_v51 = vadd.f32 %v1761_v47, %v5625_v7  ;;  %v1658_v53 = vpop.f32.mrb[54].mxu0  ;;  %4414 = vmatpush1.bf16.msra.mxu1 %v4413_v6 }
 0x230   : > { %v4764_v41 = vpop.eup %4763  ;;  %4783 = vtanh.f32 %v1760_v46  ;;  %v1659_v55 = vadd.f32 %v1658_v53, %v5625_v7  ;;  %v1660_v56 = vpop.f32.mrb[55].mxu0  ;;  %4400 = vmatprep.subr.bf16.mxu0 %v4399_v49 }
 0x231   : > { %v4766_v60 = vpop.eup %4765  ;;  %4785 = vtanh.f32 %v1762_v51  ;;  %v1661_v61 = vadd.f32 %v1660_v56, %v5625_v7  ;;  %v1765_v5 = vpop.f32.mrb[56].mxu1  ;;  %4402 = vmatpush1.bf16.msra.mxu0 %v4401_v44  ;;  %v5705_v51 = vld [vmem:[%s6495_s1 + $0x80] sm:$0xff] }
 0x232   : > { %v4768_v62 = vpop.eup %4767  ;;  %4787 = vtanh.f32 %v1659_v55  ;;  %v1766_v63 = vadd.f32 %v1765_v5, %v5631_v58  ;;  %v1767_v1 = vpop.f32.mrb[57].mxu1  ;;  %4275 = vmatmul.mubr.msk.f32.vlgmr.msra.gmra.mrb[72].mxu1 %vm1353_vm3, %v5663_v54 }
 0x233   : > { %v4770_v9 = vpop.eup %4769  ;;  %4789 = vtanh.f32 %v1661_v61  ;;  %v1768_v12 = vadd.f32 %v1767_v1, %v5631_v58  ;;  %v1664_v13 = vpop.f32.mrb[56].mxu0  ;;  %2263 = vmatprep.mubr.f32.mxu1 %v5028_v0  ;;  %v4429_v59 = vpack.c.bf16 %v4768_v62, %v4760_v45 }
 0x234   : > { %v4772_v23 = vpop.eup %4771  ;;  %4791 = vtanh.f32 %v1766_v63  ;;  %v1665_v43 = vadd.f32 %v1664_v13, %v5631_v58  ;;  %v1666_v57 = vpop.f32.mrb[57].mxu0  ;;  %4269 = vmatmul.mubr.msk.f32.vlgmr.msra.gmra.mrb[72].mxu0 %vm1353_vm3, %v5663_v54  ;;  %v4427_v36 = vpack.c.bf16 %v4770_v9, %v4762_v50 }
 0x235   : > { %v4774_v39 = vpop.eup %4773  ;;  %4793 = vtanh.f32 %v1768_v12  ;;  %v1667_v15 = vadd.f32 %v1666_v57, %v5631_v58  ;;  %v1771_v22 = vpop.f32.mrb[58].mxu1  ;;  %2162 = vmatprep.mubr.f32.mxu0 %v5028_v0  ;;  %v4417_v40 = vpack.c.bf16 %v4772_v23, %v4764_v41 }
 0x236   : > { %v4776_v52 = vpop.eup %4775  ;;  %4795 = vtanh.f32 %v1665_v43  ;;  %v1772_v32 = vadd.f32 %v1771_v22, %v5639_v31  ;;  %v1773_v33 = vpop.f32.mrb[59].mxu1  ;;  %4276 = vmatmul.mubr.msk.f32.gmra.mrb[74].mxu1 %vm1353_vm3, %v5675_v8  ;;  %4428 = vmatprep.subr.bf16.mxu1 %v4427_v36  ;;  %v4415_v34 = vpack.c.bf16 %v4774_v39, %v4766_v60 }
 0x237   : > { %v4778_v35 = vpop.eup %4777  ;;  %4797 = vtanh.f32 %v1667_v15  ;;  %v1774_v37 = vadd.f32 %v1773_v33, %v5639_v31  ;;  %v1670_v6 = vpop.f32.mrb[58].mxu0  ;;  %4430 = vmatpush1.bf16.msra.mxu1 %v4429_v59  ;;  %2269 = vmatprep.mubr.f32.mxu1 %v5028_v0 }
 0x238   : > { %v4780_v2 = vpop.eup %4779  ;;  %4799 = vtanh.f32 %v1772_v32  ;;  %v1671_v3 = vadd.f32 %v1670_v6, %v5639_v31  ;;  %v1672_v10 = vpop.f32.mrb[59].mxu0  ;;  %4270 = vmatmul.mubr.msk.f32.gmra.mrb[74].mxu0 %vm1353_vm3, %v5675_v8  ;;  %4416 = vmatprep.subr.bf16.mxu0 %v4415_v34 }
 0x239   : > { %v4782_v11 = vpop.eup %4781  ;;  %4801 = vtanh.f32 %v1774_v37  ;;  %v1673_v42 = vadd.f32 %v1672_v10, %v5639_v31  ;;  %v1943_v14 = vpop.f32.mrb[60].mxu1  ;;  %4418 = vmatpush1.bf16.msra.mxu0 %v4417_v40  ;;  %2168 = vmatprep.mubr.f32.mxu0 %v5028_v0 }
 0x23a   : > { %v4784_v44 = vpop.eup %4783  ;;  %4803 = vtanh.f32 %v1671_v3  ;;  %v1944_v45 = vadd.f32 %v1943_v14, %v5610_v17  ;;  %v1945_v46 = vpop.f32.mrb[61].mxu1  ;;  %4277 = vmatmul.mubr.msk.f32.gmra.mrb[76].mxu1 %vm1353_vm3, %v5690_v38 }
 0x23b   : > { %v4786_v47 = vpop.eup %4785  ;;  %4805 = vtanh.f32 %v1673_v42  ;;  %v1946_v49 = vadd.f32 %v1945_v46, %v5610_v17  ;;  %v1842_v50 = vpop.f32.mrb[60].mxu0  ;;  %2275 = vmatprep.mubr.f32.mxu1 %v5028_v0  ;;  %v4433_v53 = vpack.c.bf16 %v4784_v44, %v4776_v52 }
 0x23c   : > { %v4788_v41 = vpop.eup %4787  ;;  %4807 = vtanh.f32 %v1944_v45  ;;  %v1843_v55 = vadd.f32 %v1842_v50, %v5610_v17  ;;  %v1844_v56 = vpop.f32.mrb[61].mxu0  ;;  %4271 = vmatmul.mubr.msk.f32.gmra.mrb[76].mxu0 %vm1353_vm3, %v5690_v38  ;;  %v4431_v60 = vpack.c.bf16 %v4786_v47, %v4778_v35 }
 0x23d   : > { %v4790_v61 = vpop.eup %4789  ;;  %4809 = vtanh.f32 %v1946_v49  ;;  %v1845_v5 = vadd.f32 %v1844_v56, %v5610_v17  ;;  %v1949_v62 = vpop.f32.mrb[62].mxu1  ;;  %2174 = vmatprep.mubr.f32.mxu0 %v5028_v0  ;;  %v4421_v63 = vpack.c.bf16 %v4788_v41, %v4780_v2  ;;  %v5720_v17 = vld [vmem:[%s6495_s1 + $0xa8] sm:$0xff] }
 0x23e   : > { %v4792_v1 = vpop.eup %4791  ;;  %4811 = vtanh.f32 %v1843_v55  ;;  %v1950_v9 = vadd.f32 %v1949_v62, %v5613_v28  ;;  %v1951_v12 = vpop.f32.mrb[63].mxu1  ;;  %4278 = vmatmul.mubr.msk.f32.gmra.mrb[78].mxu1 %vm1353_vm3, %v5705_v51  ;;  %4432 = vmatprep.subr.bf16.mxu1 %v4431_v60  ;;  %v4419_v13 = vpack.c.bf16 %v4790_v61, %v4782_v11 }
 0x23f   : > { %v4794_v59 = vpop.eup %4793  ;;  %4813 = vtanh.f32 %v1845_v5  ;;  %v1952_v23 = vadd.f32 %v1951_v12, %v5613_v28  ;;  %v1848_v43 = vpop.f32.mrb[62].mxu0  ;;  %4434 = vmatpush1.bf16.msra.mxu1 %v4433_v53  ;;  %2281 = vmatprep.mubr.f32.mxu1 %v5028_v0 }
 0x240   : > { %v4796_v57 = vpop.eup %4795  ;;  %4815 = vtanh.f32 %v1950_v9  ;;  %v1849_v36 = vadd.f32 %v1848_v43, %v5613_v28  ;;  %v1850_v39 = vpop.f32.mrb[63].mxu0  ;;  %4272 = vmatmul.mubr.msk.f32.gmra.mrb[78].mxu0 %vm1353_vm3, %v5705_v51  ;;  %4420 = vmatprep.subr.bf16.mxu0 %v4419_v13 }
 0x241   : > { %v4798_v15 = vpop.eup %4797  ;;  %4817 = vtanh.f32 %v1952_v23  ;;  %v1851_v22 = vadd.f32 %v1850_v39, %v5613_v28  ;;  %v1955_v40 = vpop.f32.mrb[64].mxu1  ;;  %4422 = vmatpush1.bf16.msra.mxu0 %v4421_v63  ;;  %2180 = vmatprep.mubr.f32.mxu0 %v5028_v0  ;;  %v5735_v28 = vld [vmem:[%s6495_s1 + $0xd0] sm:$0xff] }
 0x242   : > { %v4800_v52 = vpop.eup %4799  ;;  %4819 = vtanh.f32 %v1849_v36  ;;  %v1956_v32 = vadd.f32 %v1955_v40, %v5619_v4  ;;  %v1957_v33 = vpop.f32.mrb[65].mxu1  ;;  %4279 = vmatmul.mubr.msk.f32.gmra.mrb[80].mxu1 %vm1353_vm3, %v5720_v17 }
 0x243   : > { %v4802_v34 = vpop.eup %4801  ;;  %4821 = vtanh.f32 %v1851_v22  ;;  %v1958_v35 = vadd.f32 %v1957_v33, %v5619_v4  ;;  %v1854_v37 = vpop.f32.mrb[64].mxu0  ;;  %2287 = vmatprep.mubr.f32.mxu1 %v5028_v0  ;;  %v4437_v6 = vpack.c.bf16 %v4800_v52, %v4792_v1 }
 0x244   : > { %v4804_v2 = vpop.eup %4803  ;;  %4823 = vtanh.f32 %v1956_v32  ;;  %v1855_v3 = vadd.f32 %v1854_v37, %v5619_v4  ;;  %v1856_v10 = vpop.f32.mrb[65].mxu0  ;;  %4273 = vmatmul.mubr.msk.f32.gmra.mrb[80].mxu0 %vm1353_vm3, %v5720_v17  ;;  %v4435_v11 = vpack.c.bf16 %v4802_v34, %v4794_v59 }
 0x245   : > { %v4806_v42 = vpop.eup %4805  ;;  %4825 = vtanh.f32 %v1958_v35  ;;  %v1857_v14 = vadd.f32 %v1856_v10, %v5619_v4  ;;  %v1961_v44 = vpop.f32.mrb[66].mxu1  ;;  %2186 = vmatprep.mubr.f32.mxu0 %v5028_v0  ;;  %v4425_v45 = vpack.c.bf16 %v4804_v2, %v4796_v57 }
 0x246   : > { %v4808_v46 = vpop.eup %4807  ;;  %4827 = vtanh.f32 %v1855_v3  ;;  %v1962_v47 = vadd.f32 %v1961_v44, %v5625_v7  ;;  %v1963_v49 = vpop.f32.mrb[67].mxu1  ;;  %4280 = vmatmul.mubr.msk.f32.gmra.mrb[82].mxu1 %vm1353_vm3, %v5735_v28  ;;  %4436 = vmatprep.subr.bf16.mxu1 %v4435_v11  ;;  %v4423_v50 = vpack.c.bf16 %v4806_v42, %v4798_v15 }
 0x247   : > { %v4810_v53 = vpop.eup %4809  ;;  %4829 = vtanh.f32 %v1857_v14  ;;  %v1964_v41 = vadd.f32 %v1963_v49, %v5625_v7  ;;  %v1860_v55 = vpop.f32.mrb[66].mxu0  ;;  %4438 = vmatpush1.bf16.msra.mxu1 %v4437_v6  ;;  %2459 = vmatprep.mubr.f32.mxu1 %v5028_v0 }
 0x248   : > { %v4812_v4 = vpop.eup %4811  ;;  %4831 = vtanh.f32 %v1962_v47  ;;  %v1861_v56 = vadd.f32 %v1860_v55, %v5625_v7  ;;  %v1862_v60 = vpop.f32.mrb[67].mxu0  ;;  %4274 = vmatmul.mubr.msk.f32.gmra.mrb[82].mxu0 %vm1353_vm3, %v5735_v28  ;;  %4424 = vmatprep.subr.bf16.mxu0 %v4423_v50 }
 0x249   : > { %v4814_v61 = vpop.eup %4813  ;;  %4833 = vtanh.f32 %v1964_v41  ;;  %v1863_v5 = vadd.f32 %v1862_v60, %v5625_v7  ;;  %v1967_v62 = vpop.f32.mrb[68].mxu1  ;;  %4426 = vmatpush1.bf16.msra.mxu0 %v4425_v45  ;;  %2358 = vmatprep.mubr.f32.mxu0 %v5028_v0 }
 0x24a   : > { %v4816_v63 = vpop.eup %4815  ;;  %4835 = vtanh.f32 %v1861_v56  ;;  %v1968_v1 = vadd.f32 %v1967_v62, %v5631_v58  ;;  %v1969_v9 = vpop.f32.mrb[69].mxu1  ;;  %4287 = vmatmul.mubr.msk.f32.vlgmr.msra.gmra.mrb[84].mxu1 %vm1353_vm3, %v5663_v54 }
 0x24b   : > { %v4818_v12 = vpop.eup %4817  ;;  %4837 = vtanh.f32 %v1863_v5  ;;  %v1970_v13 = vadd.f32 %v1969_v9, %v5631_v58  ;;  %v1866_v59 = vpop.f32.mrb[68].mxu0  ;;  %2465 = vmatprep.mubr.f32.mxu1 %v5028_v0  ;;  %v4453_v7 = vpack.c.bf16 %v4816_v63, %v4808_v46 }
 0x24c   : > { %v4820_v23 = vpop.eup %4819  ;;  %4839 = vtanh.f32 %v1968_v1  ;;  %v1867_v43 = vadd.f32 %v1866_v59, %v5631_v58  ;;  %v1868_v57 = vpop.f32.mrb[69].mxu0  ;;  %4281 = vmatmul.mubr.msk.f32.vlgmr.msra.gmra.mrb[84].mxu0 %vm1353_vm3, %v5663_v54  ;;  %v4451_v36 = vpack.c.bf16 %v4818_v12, %v4810_v53 }
 0x24d   : > { %v4822_v39 = vpop.eup %4821  ;;  %4841 = vtanh.f32 %v1970_v13  ;;  %v1869_v15 = vadd.f32 %v1868_v57, %v5631_v58  ;;  %v1973_v22 = vpop.f32.mrb[70].mxu1  ;;  %2364 = vmatprep.mubr.f32.mxu0 %v5028_v0  ;;  %v4441_v40 = vpack.c.bf16 %v4820_v23, %v4812_v4 }
 0x24e   : > { %v4824_v52 = vpop.eup %4823  ;;  %4843 = vtanh.f32 %v1867_v43  ;;  %v1974_v32 = vadd.f32 %v1973_v22, %v5639_v31  ;;  %v1975_v33 = vpop.f32.mrb[71].mxu1  ;;  %4288 = vmatmul.mubr.msk.f32.gmra.mrb[86].mxu1 %vm1353_vm3, %v5675_v8  ;;  %4452 = vmatprep.subr.bf16.mxu1 %v4451_v36  ;;  %v4439_v34 = vpack.c.bf16 %v4822_v39, %v4814_v61 }
 0x24f   : > { %v4826_v35 = vpop.eup %4825  ;;  %4845 = vtanh.f32 %v1869_v15  ;;  %v1976_v37 = vadd.f32 %v1975_v33, %v5639_v31  ;;  %v1872_v6 = vpop.f32.mrb[70].mxu0  ;;  %4454 = vmatpush1.bf16.msra.mxu1 %v4453_v7  ;;  %2471 = vmatprep.mubr.f32.mxu1 %v5028_v0 }
 0x250   : > { %v4828_v58 = vpop.eup %4827  ;;  %4847 = vtanh.f32 %v1974_v32  ;;  %v1873_v2 = vadd.f32 %v1872_v6, %v5639_v31  ;;  %v1874_v3 = vpop.f32.mrb[71].mxu0  ;;  %4282 = vmatmul.mubr.msk.f32.gmra.mrb[86].mxu0 %vm1353_vm3, %v5675_v8  ;;  %4440 = vmatprep.subr.bf16.mxu0 %v4439_v34 }
 0x251   : > { %v4830_v10 = vpop.eup %4829  ;;  %4849 = vtanh.f32 %v1976_v37  ;;  %v1875_v11 = vadd.f32 %v1874_v3, %v5639_v31  ;;  %4442 = vmatpush1.bf16.msra.mxu0 %v4441_v40  ;;  %2370 = vmatprep.mubr.f32.mxu0 %v5028_v0  ;;  %v5841_v13 = vpop.permute.xlu0 %2055 }
 0x252   : > { %v4832_v42 = vpop.eup %4831  ;;  %4851 = vtanh.f32 %v1873_v2  ;;  %4289 = vmatmul.mubr.msk.f32.gmra.mrb[88].mxu1 %vm1353_vm3, %v5690_v38 }
 0x253   : > { %v4834_v14 = vpop.eup %4833  ;;  %4853 = vtanh.f32 %v1875_v11  ;;  %2477 = vmatprep.mubr.f32.mxu1 %v5028_v0  ;;  %v4457_v44 = vpack.c.bf16 %v4832_v42, %v4824_v52 }
 0x254   : > { %v4836_v45 = vpop.eup %4835  ;;  %4283 = vmatmul.mubr.msk.f32.gmra.mrb[88].mxu0 %vm1353_vm3, %v5690_v38  ;;  %v4455_v46 = vpack.c.bf16 %v4834_v14, %v4826_v35 }
 0x255   : > { %v4838_v47 = vpop.eup %4837  ;;  %2376 = vmatprep.mubr.f32.mxu0 %v5028_v0  ;;  %v4445_v31 = vpack.c.bf16 %v4836_v45, %v4828_v58 }
 0x256   : > { %v4840_v49 = vpop.eup %4839  ;;  %4290 = vmatmul.mubr.msk.f32.gmra.mrb[90].mxu1 %vm1353_vm3, %v5705_v51  ;;  %4456 = vmatprep.subr.bf16.mxu1 %v4455_v46  ;;  %v4443_v50 = vpack.c.bf16 %v4838_v47, %v4830_v10 }
 0x257   : > { %v4842_v53 = vpop.eup %4841  ;;  %4458 = vmatpush1.bf16.msra.mxu1 %v4457_v44  ;;  %2483 = vmatprep.mubr.f32.mxu1 %v5028_v0 }
 0x258   : > { %v4844_v41 = vpop.eup %4843  ;;  %4284 = vmatmul.mubr.msk.f32.gmra.mrb[90].mxu0 %vm1353_vm3, %v5705_v51  ;;  %4444 = vmatprep.subr.bf16.mxu0 %v4443_v50 }
 0x259   : > { %v4846_v55 = vpop.eup %4845  ;;  %4446 = vmatpush1.bf16.msra.mxu0 %v4445_v31  ;;  %2382 = vmatprep.mubr.f32.mxu0 %v5028_v0 }
 0x25a   : > { %v4848_v4 = vpop.eup %4847  ;;  %4291 = vmatmul.mubr.msk.f32.gmra.mrb[92].mxu1 %vm1353_vm3, %v5720_v17 }
 0x25b   : > { %v4850_v56 = vpop.eup %4849  ;;  %2489 = vmatprep.mubr.f32.mxu1 %v5028_v0  ;;  %v4461_v60 = vpack.c.bf16 %v4848_v4, %v4840_v49  ;;  %v5860_v49 = vpop.permute.xlu0 %2067 }
 0x25c   : > { %v4852_v61 = vpop.eup %4851  ;;  %4285 = vmatmul.mubr.msk.f32.gmra.mrb[92].mxu0 %vm1353_vm3, %v5720_v17  ;;  %v4459_v5 = vpack.c.bf16 %v4850_v56, %v4842_v53 }
 0x25d   : > { %v4854_v62 = vpop.eup %4853  ;;  %2388 = vmatprep.mubr.f32.mxu0 %v5028_v0  ;;  %v4449_v63 = vpack.c.bf16 %v4852_v61, %v4844_v41 }
 0x25e   : > { %4292 = vmatmul.mubr.msk.f32.gmra.mrb[94].mxu1 %vm1353_vm3, %v5735_v28  ;;  %4460 = vmatprep.subr.bf16.mxu1 %v4459_v5  ;;  %v4447_v1 = vpack.c.bf16 %v4854_v62, %v4846_v55 }
 0x25f   : > { %4462 = vmatpush1.bf16.msra.mxu1 %v4461_v60  ;;  %2661 = vmatprep.mubr.f32.mxu1 %v5028_v0 }
 0x260   : > { %4286 = vmatmul.mubr.msk.f32.gmra.mrb[94].mxu0 %vm1353_vm3, %v5735_v28  ;;  %4448 = vmatprep.subr.bf16.mxu0 %v4447_v1 }
 0x261   : > { %4450 = vmatpush1.bf16.msra.mxu0 %v4449_v63  ;;  %2560 = vmatprep.mubr.f32.mxu0 %v5028_v0 }
 0x262   : > { %4299 = vmatmul.mubr.msk.f32.vlgmr.msra.gmra.mrb[96].mxu1 %vm1353_vm3, %v5663_v54 }
 0x263   : > { %2667 = vmatprep.mubr.f32.mxu1 %v5028_v0 }
 0x264   : > { %4293 = vmatmul.mubr.msk.f32.vlgmr.msra.gmra.mrb[96].mxu0 %vm1353_vm3, %v5663_v54  ;;  %v442_v54 = vld [vmem:[%s6495_s1 + $0x20] sm:$0xff] }
 0x265   : > { %2566 = vmatprep.mubr.f32.mxu0 %v5028_v0 }
 0x266   : > { %4300 = vmatmul.mubr.msk.f32.gmra.mrb[98].mxu1 %vm1353_vm3, %v5675_v8 }
 0x267   : > { %2673 = vmatprep.mubr.f32.mxu1 %v5028_v0 }
 0x268   : > { %4294 = vmatmul.mubr.msk.f32.gmra.mrb[98].mxu0 %vm1353_vm3, %v5675_v8  ;;  %v443_v8 = vld [vmem:[%s6495_s1 + $0x48] sm:$0xff] }
 0x269   : > { %2572 = vmatprep.mubr.f32.mxu0 %v5028_v0 }
 0x26a   : > { %4301 = vmatmul.mubr.msk.f32.gmra.mrb[100].mxu1 %vm1353_vm3, %v5690_v38 }
 0x26b   : > { %2679 = vmatprep.mubr.f32.mxu1 %v5028_v0 }
 0x26c   : > { %4295 = vmatmul.mubr.msk.f32.gmra.mrb[100].mxu0 %vm1353_vm3, %v5690_v38  ;;  %v5033_v38 = vmov 3  }
 0x26d   : > { %2578 = vmatprep.mubr.f32.mxu0 %v5028_v0  ;;  %4556 = vset.pattern.permute.xlu0 %v5033_v38 }
 0x26e   : > { %4302 = vmatmul.mubr.msk.f32.gmra.mrb[102].mxu1 %vm1353_vm3, %v5705_v51  ;;  %4557 = vset.pattern.permute.xlu1 %v5033_v38 }
 0x26f   : > { %2685 = vmatprep.mubr.f32.mxu1 %v5028_v0  ;;  %2772 = vperm.xlu0 %4556, %v442_v54  }
 0x270   : > { %4296 = vmatmul.mubr.msk.f32.gmra.mrb[102].mxu0 %vm1353_vm3, %v5705_v51  ;;  %2777 = vperm.xlu1 %4557, %v443_v8   ;;  %v5838_v51 = vpop.permute.xlu1 %2051 }
 0x271   : > { %2584 = vmatprep.mubr.f32.mxu0 %v5028_v0 }
 0x272   : > { %4303 = vmatmul.mubr.msk.f32.gmra.mrb[104].mxu1 %vm1353_vm3, %v5720_v17 }
 0x273   : > { %2691 = vmatprep.mubr.f32.mxu1 %v5028_v0 }
 0x274   : > { %4297 = vmatmul.mubr.msk.f32.gmra.mrb[104].mxu0 %vm1353_vm3, %v5720_v17  ;;  %v5845_v57 = vpop.permute.xlu1 %2059 }
 0x275   : > { %2590 = vmatprep.mubr.f32.mxu0 %v5028_v0 }
 0x276   : > { %4304 = vmatmul.mubr.msk.f32.gmra.mrb[106].mxu1 %vm1353_vm3, %v5735_v28 }
 0x277   : > { %2927 = vmatprep.mubr.f32.mxu1 %v5028_v0 }
 0x278   : > { %4298 = vmatmul.mubr.msk.f32.gmra.mrb[106].mxu0 %vm1353_vm3, %v5735_v28  ;;  %v5854_v2 = vpop.permute.xlu1 %2063 }
 0x279   : > { %2850 = vmatprep.mubr.f32.mxu0 %v5028_v0 }
 0x27c   : > { %v5865_v1 = vpop.permute.xlu1 %2071 }
 0x305   : > { %v2259_v17 = vpop.f32.mrb[72].mxu1 }
 0x306   : > { %v2261_v9 = vpop.f32.mrb[73].mxu1  ;;  %v2260_v28 = vadd.f32 %v2259_v17, %v5838_v51 }
 0x307   : > { %v2158_v12 = vpop.f32.mrb[72].mxu0  ;;  %v2262_v59 = vadd.f32 %v2261_v9, %v5838_v51 }
 0x308   : > { %v2160_v7 = vpop.f32.mrb[73].mxu0  ;;  %4855 = vtanh.f32 %v2260_v28  ;;  %v2159_v23 = vadd.f32 %v2158_v12, %v5838_v51 }
 0x309   : > { %v2265_v43 = vpop.f32.mrb[74].mxu1  ;;  %4857 = vtanh.f32 %v2262_v59  ;;  %v2161_v36 = vadd.f32 %v2160_v7, %v5838_v51 }
 0x30a   : > { %v2267_v39 = vpop.f32.mrb[75].mxu1  ;;  %v2266_v15 = vadd.f32 %v2265_v43, %v5841_v13  ;;  %4859 = vtanh.f32 %v2159_v23 }
 0x30b   : > { %v2164_v22 = vpop.f32.mrb[74].mxu0  ;;  %v2268_v40 = vadd.f32 %v2267_v39, %v5841_v13  ;;  %4861 = vtanh.f32 %v2161_v36 }
 0x30c   : > { %v2165_v52 = vadd.f32 %v2164_v22, %v5841_v13  ;;  %v2166_v32 = vpop.f32.mrb[75].mxu0  ;;  %4863 = vtanh.f32 %v2266_v15 }
 0x30d   : > { %4865 = vtanh.f32 %v2268_v40  ;;  %v2167_v33 = vadd.f32 %v2166_v32, %v5841_v13  ;;  %v2271_v34 = vpop.f32.mrb[76].mxu1 }
 0x30e   : > { %4867 = vtanh.f32 %v2165_v52  ;;  %v2272_v35 = vadd.f32 %v2271_v34, %v5845_v57  ;;  %v2273_v37 = vpop.f32.mrb[77].mxu1 }
 0x30f   : > { %4869 = vtanh.f32 %v2167_v33  ;;  %v2170_v6 = vpop.f32.mrb[76].mxu0  ;;  %v2274_v58 = vadd.f32 %v2273_v37, %v5845_v57 }
 0x310   : > { %4871 = vtanh.f32 %v2272_v35  ;;  %v2171_v3 = vadd.f32 %v2170_v6, %v5845_v57  ;;  %v2172_v10 = vpop.f32.mrb[77].mxu0 }
 0x311   : > { %4873 = vtanh.f32 %v2274_v58  ;;  %v2173_v11 = vadd.f32 %v2172_v10, %v5845_v57  ;;  %v2277_v42 = vpop.f32.mrb[78].mxu1 }
 0x312   : > { %v4856_v14 = vpop.eup %4855  ;;  %4875 = vtanh.f32 %v2171_v3  ;;  %v2279_v44 = vpop.f32.mrb[79].mxu1  ;;  %v2278_v45 = vadd.f32 %v2277_v42, %v5854_v2 }
 0x313   : > { %v4858_v46 = vpop.eup %4857  ;;  %4877 = vtanh.f32 %v2173_v11  ;;  %v2176_v47 = vpop.f32.mrb[78].mxu0  ;;  %v2280_v31 = vadd.f32 %v2279_v44, %v5854_v2 }
 0x314   : > { %v4860_v50 = vpop.eup %4859  ;;  %v2177_v53 = vadd.f32 %v2176_v47, %v5854_v2  ;;  %v2178_v41 = vpop.f32.mrb[79].mxu0  ;;  %4879 = vtanh.f32 %v2278_v45 }
 0x315   : > { %v4862_v55 = vpop.eup %4861  ;;  %4881 = vtanh.f32 %v2280_v31  ;;  %v2179_v4 = vadd.f32 %v2178_v41, %v5854_v2  ;;  %v2283_v56 = vpop.f32.mrb[80].mxu1 }
 0x316   : > { %v4864_v60 = vpop.eup %4863  ;;  %4883 = vtanh.f32 %v2177_v53  ;;  %v2285_v61 = vpop.f32.mrb[81].mxu1  ;;  %v2284_v5 = vadd.f32 %v2283_v56, %v5860_v49 }
 0x317   : > { %v4866_v62 = vpop.eup %4865  ;;  %4885 = vtanh.f32 %v2179_v4  ;;  %v2182_v63 = vpop.f32.mrb[80].mxu0  ;;  %v4477_v54 = vpack.c.bf16 %v4864_v60, %v4856_v14  ;;  %v2286_v8 = vadd.f32 %v2285_v61, %v5860_v49 }
 0x318   : > { %v4868_v38 = vpop.eup %4867  ;;  %v2184_v17 = vpop.f32.mrb[81].mxu0  ;;  %v4475_v9 = vpack.c.bf16 %v4866_v62, %v4858_v46  ;;  %4887 = vtanh.f32 %v2284_v5  ;;  %v2183_v28 = vadd.f32 %v2182_v63, %v5860_v49 }
 0x319   : > { %v4870_v12 = vpop.eup %4869  ;;  %v2289_v59 = vpop.f32.mrb[82].mxu1  ;;  %v4465_v7 = vpack.c.bf16 %v4868_v38, %v4860_v50  ;;  %4889 = vtanh.f32 %v2286_v8  ;;  %v2185_v23 = vadd.f32 %v2184_v17, %v5860_v49 }
 0x31a   : > { %v4872_v43 = vpop.eup %4871  ;;  %v2291_v36 = vpop.f32.mrb[83].mxu1  ;;  %4476 = vmatprep.subr.bf16.mxu1 %v4475_v9  ;;  %v4463_v39 = vpack.c.bf16 %v4870_v12, %v4862_v55  ;;  %v2290_v15 = vadd.f32 %v2289_v59, %v5865_v1  ;;  %4891 = vtanh.f32 %v2183_v28 }
 0x31b   : > { %v4874_v22 = vpop.eup %4873  ;;  %v2188_v40 = vpop.f32.mrb[82].mxu0  ;;  %v2292_v52 = vadd.f32 %v2291_v36, %v5865_v1  ;;  %4478 = vmatpush1.bf16.msra.mxu1 %v4477_v54  ;;  %4893 = vtanh.f32 %v2185_v23 }
 0x31c   : > { %v4876_v32 = vpop.eup %4875  ;;  %v2189_v33 = vadd.f32 %v2188_v40, %v5865_v1  ;;  %v2190_v34 = vpop.f32.mrb[83].mxu0  ;;  %4464 = vmatprep.subr.bf16.mxu0 %v4463_v39  ;;  %4895 = vtanh.f32 %v2290_v15 }
 0x31d   : > { %v4878_v35 = vpop.eup %4877  ;;  %4897 = vtanh.f32 %v2292_v52  ;;  %v2191_v37 = vadd.f32 %v2190_v34, %v5865_v1  ;;  %4466 = vmatpush1.bf16.msra.mxu0 %v4465_v7  ;;  %v2461_v6 = vpop.f32.mrb[84].mxu1 }
 0x31e   : > { %v4880_v58 = vpop.eup %4879  ;;  %4899 = vtanh.f32 %v2189_v33  ;;  %v2462_v3 = vadd.f32 %v2461_v6, %v5838_v51  ;;  %v2463_v10 = vpop.f32.mrb[85].mxu1 }
 0x31f   : > { %v4882_v11 = vpop.eup %4881  ;;  %4901 = vtanh.f32 %v2191_v37  ;;  %v2360_v42 = vpop.f32.mrb[84].mxu0  ;;  %v2464_v14 = vadd.f32 %v2463_v10, %v5838_v51  ;;  %v4481_v44 = vpack.c.bf16 %v4880_v58, %v4872_v43 }
 0x320   : > { %v4884_v45 = vpop.eup %4883  ;;  %4903 = vtanh.f32 %v2462_v3  ;;  %v2361_v46 = vadd.f32 %v2360_v42, %v5838_v51  ;;  %v2362_v47 = vpop.f32.mrb[85].mxu0  ;;  %v4479_v31 = vpack.c.bf16 %v4882_v11, %v4874_v22 }
 0x321   : > { %v4886_v50 = vpop.eup %4885  ;;  %4905 = vtanh.f32 %v2464_v14  ;;  %v2363_v53 = vadd.f32 %v2362_v47, %v5838_v51  ;;  %v2467_v41 = vpop.f32.mrb[86].mxu1  ;;  %v4469_v55 = vpack.c.bf16 %v4884_v45, %v4876_v32  ;;  %v5891_v14 = vld [vmem:[%s6495_s1 + $0x10] sm:$0xff] }
 0x322   : > { %v4888_v4 = vpop.eup %4887  ;;  %4907 = vtanh.f32 %v2361_v46  ;;  %v2468_v56 = vadd.f32 %v2467_v41, %v5841_v13  ;;  %v2469_v60 = vpop.f32.mrb[87].mxu1  ;;  %4480 = vmatprep.subr.bf16.mxu1 %v4479_v31  ;;  %v4467_v61 = vpack.c.bf16 %v4886_v50, %v4878_v35 }
 0x323   : > { %v4890_v5 = vpop.eup %4889  ;;  %4909 = vtanh.f32 %v2363_v53  ;;  %v2366_v62 = vpop.f32.mrb[86].mxu0  ;;  %v2470_v63 = vadd.f32 %v2469_v60, %v5841_v13  ;;  %4482 = vmatpush1.bf16.msra.mxu1 %v4481_v44 }
 0x324   : > { %v4892_v54 = vpop.eup %4891  ;;  %4911 = vtanh.f32 %v2468_v56  ;;  %v2367_v8 = vadd.f32 %v2366_v62, %v5841_v13  ;;  %v2368_v38 = vpop.f32.mrb[87].mxu0  ;;  %4468 = vmatprep.subr.bf16.mxu0 %v4467_v61 }
 0x325   : > { %v4894_v17 = vpop.eup %4893  ;;  %4913 = vtanh.f32 %v2470_v63  ;;  %v2369_v9 = vadd.f32 %v2368_v38, %v5841_v13  ;;  %v2473_v28 = vpop.f32.mrb[88].mxu1  ;;  %4470 = vmatpush1.bf16.msra.mxu0 %v4469_v55 }
 0x326   : > { %v4896_v12 = vpop.eup %4895  ;;  %4915 = vtanh.f32 %v2367_v8  ;;  %v2474_v59 = vadd.f32 %v2473_v28, %v5845_v57  ;;  %v2475_v7 = vpop.f32.mrb[89].mxu1 }
 0x327   : > { %v4898_v23 = vpop.eup %4897  ;;  %4917 = vtanh.f32 %v2369_v9  ;;  %v2476_v43 = vadd.f32 %v2475_v7, %v5845_v57  ;;  %v2372_v36 = vpop.f32.mrb[88].mxu0  ;;  %v4485_v39 = vpack.c.bf16 %v4896_v12, %v4888_v4 }
 0x328   : > { %v4900_v15 = vpop.eup %4899  ;;  %4919 = vtanh.f32 %v2474_v59  ;;  %v2373_v22 = vadd.f32 %v2372_v36, %v5845_v57  ;;  %v2374_v40 = vpop.f32.mrb[89].mxu0  ;;  %v4483_v52 = vpack.c.bf16 %v4898_v23, %v4890_v5  ;;  %v5903_v5 = vld [vmem:[%s6495_s1 + $0x38] sm:$0xff] }
 0x329   : > { %v4902_v32 = vpop.eup %4901  ;;  %4921 = vtanh.f32 %v2476_v43  ;;  %v2375_v33 = vadd.f32 %v2374_v40, %v5845_v57  ;;  %v2479_v34 = vpop.f32.mrb[90].mxu1  ;;  %v4473_v35 = vpack.c.bf16 %v4900_v15, %v4892_v54 }
 0x32a   : > { %v4904_v37 = vpop.eup %4903  ;;  %4923 = vtanh.f32 %v2373_v22  ;;  %v2480_v6 = vadd.f32 %v2479_v34, %v5854_v2  ;;  %v2481_v58 = vpop.f32.mrb[91].mxu1  ;;  %4484 = vmatprep.subr.bf16.mxu1 %v4483_v52  ;;  %v4471_v3 = vpack.c.bf16 %v4902_v32, %v4894_v17 }
 0x32b   : > { %v4906_v10 = vpop.eup %4905  ;;  %4925 = vtanh.f32 %v2375_v33  ;;  %v2482_v11 = vadd.f32 %v2481_v58, %v5854_v2  ;;  %v2378_v42 = vpop.f32.mrb[90].mxu0  ;;  %4486 = vmatpush1.bf16.msra.mxu1 %v4485_v39 }
 0x32c   : > { %v4908_v44 = vpop.eup %4907  ;;  %4927 = vtanh.f32 %v2480_v6  ;;  %v2379_v45 = vadd.f32 %v2378_v42, %v5854_v2  ;;  %v2380_v46 = vpop.f32.mrb[91].mxu0  ;;  %4472 = vmatprep.subr.bf16.mxu0 %v4471_v3 }
 0x32d   : > { %v4910_v47 = vpop.eup %4909  ;;  %4929 = vtanh.f32 %v2482_v11  ;;  %v2381_v31 = vadd.f32 %v2380_v46, %v5854_v2  ;;  %v2485_v50 = vpop.f32.mrb[92].mxu1  ;;  %4474 = vmatpush1.bf16.msra.mxu0 %v4473_v35 }
 0x32e   : > { %v4912_v53 = vpop.eup %4911  ;;  %4931 = vtanh.f32 %v2379_v45  ;;  %v2486_v41 = vadd.f32 %v2485_v50, %v5860_v49  ;;  %v2487_v55 = vpop.f32.mrb[93].mxu1  ;;  %4307 = vmatmul.mubr.msk.f32.vlgmr.msra.gmra.mrb[108].mxu1 %vm1353_vm3, %v5891_v14 }
 0x32f   : > { %v4914_v4 = vpop.eup %4913  ;;  %4933 = vtanh.f32 %v2381_v31  ;;  %v2488_v56 = vadd.f32 %v2487_v55, %v5860_v49  ;;  %v2384_v60 = vpop.f32.mrb[92].mxu0  ;;  %v4501_v61 = vpack.c.bf16 %v4912_v53, %v4904_v37  ;;  %2933 = vmatprep.mubr.f32.mxu1 %v5028_v0 }
 0x330   : > { %v4916_v62 = vpop.eup %4915  ;;  %4935 = vtanh.f32 %v2486_v41  ;;  %v2385_v63 = vadd.f32 %v2384_v60, %v5860_v49  ;;  %v2386_v54 = vpop.f32.mrb[93].mxu0  ;;  %v4499_v8 = vpack.c.bf16 %v4914_v4, %v4906_v10  ;;  %4305 = vmatmul.mubr.msk.f32.vlgmr.msra.gmra.mrb[108].mxu0 %vm1353_vm3, %v5891_v14 }
 0x331   : > { %v4918_v38 = vpop.eup %4917  ;;  %4937 = vtanh.f32 %v2488_v56  ;;  %v2387_v17 = vadd.f32 %v2386_v54, %v5860_v49  ;;  %v2491_v9 = vpop.f32.mrb[94].mxu1  ;;  %v4489_v28 = vpack.c.bf16 %v4916_v62, %v4908_v44  ;;  %2856 = vmatprep.mubr.f32.mxu0 %v5028_v0 }
 0x332   : > { %v4920_v12 = vpop.eup %4919  ;;  %4939 = vtanh.f32 %v2385_v63  ;;  %v2492_v59 = vadd.f32 %v2491_v9, %v5865_v1  ;;  %v2493_v7 = vpop.f32.mrb[95].mxu1  ;;  %4500 = vmatprep.subr.bf16.mxu1 %v4499_v8  ;;  %v4487_v23 = vpack.c.bf16 %v4918_v38, %v4910_v47  ;;  %4308 = vmatmul.mubr.msk.f32.gmra.mrb[110].mxu1 %vm1353_vm3, %v5903_v5 }
 0x333   : > { %v4922_v43 = vpop.eup %4921  ;;  %4941 = vtanh.f32 %v2387_v17  ;;  %v2494_v36 = vadd.f32 %v2493_v7, %v5865_v1  ;;  %v2390_v39 = vpop.f32.mrb[94].mxu0  ;;  %4502 = vmatpush1.bf16.msra.mxu1 %v4501_v61  ;;  %3081 = vmatprep.mubr.f32.mxu1 %v5028_v0 }
 0x334   : > { %v4924_v15 = vpop.eup %4923  ;;  %4943 = vtanh.f32 %v2492_v59  ;;  %v2391_v22 = vadd.f32 %v2390_v39, %v5865_v1  ;;  %v2392_v40 = vpop.f32.mrb[95].mxu0  ;;  %4488 = vmatprep.subr.bf16.mxu0 %v4487_v23  ;;  %4306 = vmatmul.mubr.msk.f32.gmra.mrb[110].mxu0 %vm1353_vm3, %v5903_v5 }
 0x335   : > { %v4926_v52 = vpop.eup %4925  ;;  %4945 = vtanh.f32 %v2494_v36  ;;  %v2393_v32 = vadd.f32 %v2392_v40, %v5865_v1  ;;  %v2663_v33 = vpop.f32.mrb[96].mxu1  ;;  %4490 = vmatpush1.bf16.msra.mxu0 %v4489_v28  ;;  %3004 = vmatprep.mubr.f32.mxu0 %v5028_v0 }
 0x336   : > { %v4928_v34 = vpop.eup %4927  ;;  %4947 = vtanh.f32 %v2391_v22  ;;  %v2664_v35 = vadd.f32 %v2663_v33, %v5838_v51  ;;  %v2665_v37 = vpop.f32.mrb[97].mxu1 }
 0x337   : > { %v4930_v6 = vpop.eup %4929  ;;  %4949 = vtanh.f32 %v2393_v32  ;;  %v2666_v58 = vadd.f32 %v2665_v37, %v5838_v51  ;;  %v2562_v3 = vpop.f32.mrb[96].mxu0  ;;  %v4505_v10 = vpack.c.bf16 %v4928_v34, %v4920_v12 }
 0x338   : > { %v4932_v11 = vpop.eup %4931  ;;  %4951 = vtanh.f32 %v2664_v35  ;;  %v2563_v42 = vadd.f32 %v2562_v3, %v5838_v51  ;;  %v2564_v44 = vpop.f32.mrb[97].mxu0  ;;  %v4503_v45 = vpack.c.bf16 %v4930_v6, %v4922_v43 }
 0x339   : > { %v4934_v46 = vpop.eup %4933  ;;  %4953 = vtanh.f32 %v2666_v58  ;;  %v2565_v47 = vadd.f32 %v2564_v44, %v5838_v51  ;;  %v2669_v31 = vpop.f32.mrb[98].mxu1  ;;  %v4493_v50 = vpack.c.bf16 %v4932_v11, %v4924_v15 }
 0x33a   : > { %v4936_v53 = vpop.eup %4935  ;;  %4955 = vtanh.f32 %v2563_v42  ;;  %v2670_v41 = vadd.f32 %v2669_v31, %v5841_v13  ;;  %v2671_v55 = vpop.f32.mrb[99].mxu1  ;;  %4504 = vmatprep.subr.bf16.mxu1 %v4503_v45  ;;  %v4491_v4 = vpack.c.bf16 %v4934_v46, %v4926_v52 }
 0x33b   : > { %v4938_v56 = vpop.eup %4937  ;;  %4957 = vtanh.f32 %v2565_v47  ;;  %v2672_v60 = vadd.f32 %v2671_v55, %v5841_v13  ;;  %v2568_v61 = vpop.f32.mrb[98].mxu0  ;;  %4506 = vmatpush1.bf16.msra.mxu1 %v4505_v10 }
 0x33c   : > { %v4940_v62 = vpop.eup %4939  ;;  %4959 = vtanh.f32 %v2670_v41  ;;  %v2569_v63 = vadd.f32 %v2568_v61, %v5841_v13  ;;  %v2570_v51 = vpop.f32.mrb[99].mxu0  ;;  %4492 = vmatprep.subr.bf16.mxu0 %v4491_v4 }
 0x33d   : > { %v4942_v54 = vpop.eup %4941  ;;  %4961 = vtanh.f32 %v2672_v60  ;;  %v2571_v8 = vadd.f32 %v2570_v51, %v5841_v13  ;;  %v2675_v38 = vpop.f32.mrb[100].mxu1  ;;  %4494 = vmatpush1.bf16.msra.mxu0 %v4493_v50 }
 0x33e   : > { %v4944_v17 = vpop.eup %4943  ;;  %4963 = vtanh.f32 %v2569_v63  ;;  %v2676_v9 = vadd.f32 %v2675_v38, %v5845_v57  ;;  %v2677_v28 = vpop.f32.mrb[101].mxu1 }
 0x33f   : > { %v4946_v12 = vpop.eup %4945  ;;  %4965 = vtanh.f32 %v2571_v8  ;;  %v2678_v59 = vadd.f32 %v2677_v28, %v5845_v57  ;;  %v2574_v7 = vpop.f32.mrb[100].mxu0  ;;  %v4509_v23 = vpack.c.bf16 %v4944_v17, %v4936_v53 }
 0x340   : > { %v4948_v43 = vpop.eup %4947  ;;  %4967 = vtanh.f32 %v2676_v9  ;;  %v2575_v36 = vadd.f32 %v2574_v7, %v5845_v57  ;;  %v2576_v39 = vpop.f32.mrb[101].mxu0  ;;  %v4507_v15 = vpack.c.bf16 %v4946_v12, %v4938_v56 }
 0x341   : > { %v4950_v13 = vpop.eup %4949  ;;  %4969 = vtanh.f32 %v2678_v59  ;;  %v2577_v22 = vadd.f32 %v2576_v39, %v5845_v57  ;;  %v2681_v40 = vpop.f32.mrb[102].mxu1  ;;  %v4497_v52 = vpack.c.bf16 %v4948_v43, %v4940_v62 }
 0x342   : > { %v4952_v32 = vpop.eup %4951  ;;  %4971 = vtanh.f32 %v2575_v36  ;;  %v2682_v33 = vadd.f32 %v2681_v40, %v5854_v2  ;;  %v2683_v34 = vpop.f32.mrb[103].mxu1  ;;  %4508 = vmatprep.subr.bf16.mxu1 %v4507_v15  ;;  %v4495_v35 = vpack.c.bf16 %v4950_v13, %v4942_v54 }
 0x343   : > { %v4954_v37 = vpop.eup %4953  ;;  %4973 = vtanh.f32 %v2577_v22  ;;  %v2684_v6 = vadd.f32 %v2683_v34, %v5854_v2  ;;  %v2580_v58 = vpop.f32.mrb[102].mxu0  ;;  %4510 = vmatpush1.bf16.msra.mxu1 %v4509_v23 }
 0x344   : > { %v4956_v3 = vpop.eup %4955  ;;  %4975 = vtanh.f32 %v2682_v33  ;;  %v2581_v10 = vadd.f32 %v2580_v58, %v5854_v2  ;;  %v2582_v57 = vpop.f32.mrb[103].mxu0  ;;  %4496 = vmatprep.subr.bf16.mxu0 %v4495_v35 }
 0x345   : > { %v4958_v11 = vpop.eup %4957  ;;  %4977 = vtanh.f32 %v2684_v6  ;;  %v2583_v42 = vadd.f32 %v2582_v57, %v5854_v2  ;;  %v2687_v44 = vpop.f32.mrb[104].mxu1  ;;  %4498 = vmatpush1.bf16.msra.mxu0 %v4497_v52 }
 0x346   : > { %v4960_v45 = vpop.eup %4959  ;;  %4979 = vtanh.f32 %v2581_v10  ;;  %v2688_v46 = vadd.f32 %v2687_v44, %v5860_v49  ;;  %v2689_v47 = vpop.f32.mrb[105].mxu1  ;;  %4311 = vmatmul.mubr.msk.f32.vlgmr.msra.gmra.mrb[112].mxu1 %vm1353_vm3, %v5891_v14 }
 0x347   : > { %v4962_v31 = vpop.eup %4961  ;;  %4981 = vtanh.f32 %v2583_v42  ;;  %v2690_v50 = vadd.f32 %v2689_v47, %v5860_v49  ;;  %v2586_v53 = vpop.f32.mrb[104].mxu0  ;;  %3087 = vmatprep.mubr.f32.mxu1 %v5028_v0  ;;  %v4525_v41 = vpack.c.bf16 %v4960_v45, %v4952_v32  ;;  %v197_v42 = vmul.f32 %v5151_v29, %v5127_v16 }
 0x348   : > { %v4964_v55 = vpop.eup %4963  ;;  %4983 = vtanh.f32 %v2688_v46  ;;  %v2587_v2 = vadd.f32 %v2586_v53, %v5860_v49  ;;  %v2588_v4 = vpop.f32.mrb[105].mxu0  ;;  %4309 = vmatmul.mubr.msk.f32.vlgmr.msra.gmra.mrb[112].mxu0 %vm1353_vm3, %v5891_v14  ;;  %v4523_v56 = vpack.c.bf16 %v4962_v31, %v4954_v37  ;;  %v198_v46 = vmul.f32 %v5153_v30, %v5129_v19 }
 0x349   : > { %v4966_v60 = vpop.eup %4965  ;;  %4985 = vtanh.f32 %v2690_v50  ;;  %v2589_v61 = vadd.f32 %v2588_v4, %v5860_v49  ;;  %v2693_v62 = vpop.f32.mrb[106].mxu1  ;;  %3010 = vmatprep.mubr.f32.mxu0 %v5028_v0  ;;  %v4513_v63 = vpack.c.bf16 %v4964_v55, %v4956_v3  ;;  %v380_v44 = vmul.f32 2.5, %v197_v42 }
 0x34a   : > { %v4968_v51 = vpop.eup %4967  ;;  %4987 = vtanh.f32 %v2587_v2  ;;  %v2694_v54 = vadd.f32 %v2693_v62, %v5865_v1  ;;  %v2695_v8 = vpop.f32.mrb[107].mxu1  ;;  %4524 = vmatprep.subr.bf16.mxu1 %v4523_v56  ;;  %4312 = vmatmul.mubr.msk.f32.gmra.mrb[114].mxu1 %vm1353_vm3, %v5903_v5  ;;  %v4511_v38 = vpack.c.bf16 %v4966_v60, %v4958_v11  ;;  %v381_v31 = vmul.f32 2.5, %v198_v46 }
 0x34b   : > { %v4970_v17 = vpop.eup %4969  ;;  %4989 = vtanh.f32 %v2589_v61  ;;  %v2696_v9 = vadd.f32 %v2695_v8, %v5865_v1  ;;  %v2592_v28 = vpop.f32.mrb[106].mxu0  ;;  %4526 = vmatpush1.bf16.msra.mxu1 %v4525_v41  ;;  %3235 = vmatprep.mubr.f32.mxu1 %v5028_v0  ;;  %v4179_v45 = vadd.f32 -1.25, %v380_v44  ;;  %v3636_v4 = vstv %s3629_s11 }
 0x34c   : > { %v4972_v49 = vpop.eup %4971  ;;  %4991 = vtanh.f32 %v2694_v54  ;;  %v2593_v12 = vadd.f32 %v2592_v28, %v5865_v1  ;;  %v2594_v59 = vpop.f32.mrb[107].mxu0  ;;  %4310 = vmatmul.mubr.msk.f32.gmra.mrb[114].mxu0 %vm1353_vm3, %v5903_v5  ;;  %4512 = vmatprep.subr.bf16.mxu0 %v4511_v38  ;;  %v4180_v50 = vadd.f32 -1.25, %v381_v31 }
 0x34d   : > { %v4974_v7 = vpop.eup %4973  ;;  %4993 = vtanh.f32 %v2696_v9  ;;  %v2595_v23 = vadd.f32 %v2594_v59, %v5865_v1  ;;  %4514 = vmatpush1.bf16.msra.mxu0 %v4513_v63  ;;  %3158 = vmatprep.mubr.f32.mxu0 %v5028_v0  ;;  %v386_v47 = vmax.f32 %v4179_v45, 0.0 }
 0x34e   : > { %v4976_v43 = vpop.eup %4975  ;;  %4995 = vtanh.f32 %v2593_v12  ;;  %v387_v41 = vmax.f32 %v4180_v50, 0.0  ;;  %v5034_v50 = vmov 1966171168  }
 0x34f   : > { %v4978_v36 = vpop.eup %4977  ;;  %4997 = vtanh.f32 %v2595_v23  ;;  %v4529_v39 = vpack.c.bf16 %v4976_v43, %v4968_v51 }
 0x350   : > { %v4980_v15 = vpop.eup %4979  ;;  %v4527_v13 = vpack.c.bf16 %v4978_v36, %v4970_v17  ;;  %4999 = vlog2.f32 %v197_v42  ;;  %v390_v19 = vmin.f32 %v387_v41, 1.0  ;;  %v6018_v41 = vsub.s32 1, %v5136_v21 }
 0x351   : > { %v4982_v22 = vpop.eup %4981  ;;  %v4517_v40 = vpack.c.bf16 %v4980_v15, %v4972_v49  ;;  %5001 = vlog2.f32 %v198_v46 }
 0x352   : > { %v4984_v52 = vpop.eup %4983  ;;  %4528 = vmatprep.subr.bf16.mxu1 %v4527_v13  ;;  %v4515_v32 = vpack.c.bf16 %v4982_v22, %v4974_v7  ;;  %v393_v8 = vmul.f32 -6.0, %v390_v19  ;;  %v5017_v7 = vld [vmem:[%s5096_s27] sm:$0xff]  ;;  %v405_v22 = vmul.f32 %v390_v19, %v390_v19  ;;  %6504 = vst [vmem:[#allocation3_spill] sm:$0xff] %v6018_v41 }
 0x353   : > { %v4986_v33 = vpop.eup %4985  ;;  %4530 = vmatpush1.bf16.msra.mxu1 %v4529_v39  ;;  %v5973_v23 = vand.u32 2147483647, %v5017_v7 }
 0x354   : > { %v4988_v34 = vpop.eup %4987  ;;  %4516 = vmatprep.subr.bf16.mxu0 %v4515_v32  ;;  %v396_v59 = vadd.f32 15.0, %v393_v8 }
 0x355   : > { %v4990_v1 = vpop.eup %4989  ;;  %4518 = vmatpush1.bf16.msra.mxu0 %v4517_v40  ;;  %v3404_v46 = vrot.slane %v5973_v23, %v5149_v27 }
 0x356   : > { %v4992_v35 = vpop.eup %4991  ;;  %v399_v13 = vmul.f32 %v396_v59, %v390_v19 }
 0x357   : > { %v4994_v37 = vpop.eup %4993  ;;  %v4533_v6 = vpack.c.bf16 %v4992_v35, %v4984_v52  ;;  %v5977_v52 = vmul.f32 %v5151_v29, %v5973_v23 }
 0x358   : > { %v4996_v58 = vpop.eup %4995  ;;  %v4531_v3 = vpack.c.bf16 %v4994_v37, %v4986_v33  ;;  %v5018_v33 = vld [vmem:[%s5096_s27 + $0x8] sm:$0xff] }
 0x359   : > { %v4998_v10 = vpop.eup %4997  ;;  %v4521_v57 = vpack.c.bf16 %v4996_v58, %v4988_v34  ;;  %v5980_v34 = vand.u32 2147483647, %v5018_v33  ;;  %v4183_v58 = vadd.f32 -10.0, %v399_v13  ;;  %v3656_v44 = vrot.slane %v5977_v52, %v5143_v25 }
 0x35a   : > { %4532 = vmatprep.subr.bf16.mxu1 %v4531_v3  ;;  %v4519_v11 = vpack.c.bf16 %v4998_v10, %v4990_v1  ;;  %v5000_v53 = vpop.eup %4999  ;;  %v5019_v1 = vld [vmem:[%s5096_s27 + $0x10] sm:$0xff]  ;;  %v408_v3 = vmul.f32 %v405_v22, %v390_v19  ;;  %v3660_v45 = vrot.slane %v5977_v52, %v5146_v26 }
 0x35b   : > { %4534 = vmatpush1.bf16.msra.mxu1 %v4533_v6  ;;  %v3631_v16 = vmul.f32 0.6931472, %v5000_v53  ;;  %v5002_v56 = vpop.eup %5001  ;;  %v5983_v35 = vand.u32 2147483647, %v5019_v1  ;;  %v3254_v6 = vrot.slane %v5151_v29, 7  ;;  %v6042_v8 = vmul.f32 %v5153_v30, %v5980_v34 }
 0x35c   : > { %4520 = vmatprep.subr.bf16.mxu0 %v4519_v11  ;;  %v3633_v51 = vmul.f32 0.6931472, %v5002_v56  ;;  %v3652_v11 = vrot.slane %v5977_v52, %v5140_v24 }
 0x35d   : > { %4522 = vmatpush1.bf16.msra.mxu0 %v4521_v57  ;;  %v3637_v61 = vmul.f32 %v3636_v4, %v3631_v16  ;;  %v5992_v57 = vsub.s32 3, %v5136_v21  ;;  %v6015_v53 = vmul.f32 %v3254_v6, %v5973_v23  ;;  %v411_v16 = vmul.f32 %v4183_v58, %v408_v3  ;;  %v6086_v3 = vpop.permute.xlu0 %2772 }
 0x35e   : > { %4315 = vmatmul.mubr.msk.f32.vlgmr.msra.gmra.mrb[116].mxu1 %vm1353_vm3, %v5891_v14  ;;  %v3638_v49 = vmul.f32 %v3636_v4, %v3633_v51 }
 0x35f   : > { %3241 = vmatprep.mubr.f32.mxu1 %v5028_v0  ;;  %v3640_v38 = vmul.f32 1.442695, %v3637_v61  ;;  %v3392_v61 = vrot.slane %v5973_v23, %v5140_v24 }
 0x360   : > { %4313 = vmatmul.mubr.msk.f32.vlgmr.msra.gmra.mrb[116].mxu0 %vm1353_vm3, %v5891_v14  ;;  %v389_v14 = vmin.f32 %v386_v47, 1.0  ;;  %v3642_v39 = vmul.f32 1.442695, %v3638_v49 }
 0x361   : > { %3164 = vmatprep.mubr.f32.mxu0 %v5028_v0  ;;  %v199_v0 = vmul.f32 %v5182_v48, %v5133_v20 }
 0x362   : > { %4316 = vmatmul.mubr.msk.f32.gmra.mrb[118].mxu1 %vm1353_vm3, %v5903_v5  ;;  %v404_v20 = vmul.f32 %v389_v14, %v389_v14 }
 0x363   : > { %5003 = vlog2.f32 %v199_v0  ;;  %v382_v55 = vmul.f32 2.5, %v199_v0  ;;  %v6010_v0 = vsub.s32 7, %v5136_v21 }
 0x364   : > { %4314 = vmatmul.mubr.msk.f32.gmra.mrb[118].mxu0 %vm1353_vm3, %v5903_v5  ;;  %v392_v5 = vmul.f32 -6.0, %v389_v14  ;;  %v407_v9 = vmul.f32 %v404_v20, %v389_v14  ;;  %5005 = vpow2.f32 %v3640_v38 }
 0x365   : > { %v4181_v62 = vadd.f32 -1.25, %v382_v55  ;;  %5007 = vpow2.f32 %v3642_v39  ;;  %v3255_v55 = vrot.slane %v5153_v30, 7  ;;  %v3524_v19 = vrot.slane %v5973_v23, %v6010_v0 }
 0x366   : > { %v395_v2 = vadd.f32 15.0, %v392_v5  ;;  %v4044_v5 = vunpack.c.l.s4 %v5034_v50 }
 0x367   : > { %v388_v28 = vmax.f32 %v4181_v62, 0.0  ;;  %v6051_v49 = vmul.f32 %v3255_v55, %v5980_v34 }
 0x368   : > { %v398_v63 = vmul.f32 %v395_v2, %v389_v14  ;;  %v3664_v14 = vrot.slane %v5977_v52, %v5149_v27  ;;  %v4045_v51 = vunpack.c.0.s8 %v4044_v5 }
 0x369   : > { %v391_v36 = vmin.f32 %v388_v28, 1.0  ;;  %v414_v28 = vadd.f32 1.0, %v411_v16  ;;  %6505 = vst [vmem:[#allocation4_spill] sm:$0xff] %v6051_v49 }
 0x36a   : > { %v4182_v17 = vadd.f32 -10.0, %v398_v63 }
 0x36b   : > { %v394_v32 = vmul.f32 -6.0, %v391_v36  ;;  %v6077_v1 = vrot.slane %v414_v28, %v5140_v24  ;;  %v6080_v6 = vrot.slane %v414_v28, %v5146_v26  ;;  %v6091_v50 = vrot.slane %v414_v28, %v5143_v25 }
 0x36c   : > { %v410_v43 = vmul.f32 %v4182_v17, %v407_v9  ;;  %v3775_v17 = vrot.slane %v6015_v53, %v6018_v41  ;;  %v6094_v5 = vrot.slane %v414_v28, %v5149_v27 }
 0x36d   : > { %v5004_v60 = vpop.eup %5003  ;;  %v397_v42 = vadd.f32 15.0, %v394_v32 }
 0x36e   : > { %v3635_v54 = vmul.f32 0.6931472, %v5004_v60  ;;  %v413_v40 = vadd.f32 1.0, %v410_v43  ;;  %v6005_v47 = vpop.eup %5005  ;;  %v406_v60 = vmul.f32 %v391_v36, %v391_v36 }
 0x36f   : > { %v400_v56 = vmul.f32 %v397_v42, %v391_v36  ;;  %v6044_v38 = vpop.eup %5007 }
 0x370   : > { %v3639_v12 = vmul.f32 %v3636_v4, %v3635_v54  ;;  %v5989_v10 = vrot.slane %v413_v40, %v5143_v25  ;;  %v6001_v29 = vrot.slane %v413_v40, %v5149_v27  ;;  %v6022_v2 = vrot.slane %v413_v40, %v5140_v24 }
 0x371   : > { %v6025_v4 = vsub.s32 5, %v5136_v21  ;;  %v6038_v54 = vrot.slane %v413_v40, %v5146_v26  ;;  %v4184_v7 = vadd.f32 -10.0, %v400_v56  ;;  %v409_v43 = vmul.f32 %v406_v60, %v391_v36 }
 0x372   : > { %v3644_v15 = vmul.f32 1.442695, %v3639_v12  ;;  %v6068_v40 = vsub.s32 %v4045_v51, %v5136_v21 }
 0x373   : > { %v3783_v59 = vrot.slane %v6015_v53, %v6025_v4  ;;  %v412_v16 = vmul.f32 %v4184_v7, %v409_v43  ;;  %v6124_v7 = vpop.permute.xlu1 %2777  ;;  %v6143_v43 = vmul.f32 %v5182_v48, %v5983_v35 }
 0x374   : > { %5009 = vpow2.f32 %v3644_v15 }
 0x375   : > { %v6130_v58 = vadd.f32 1.0, %v412_v16 }
 0x37e   : > { %v6053_v12 = vpop.eup %5009 }
 0x37f   : > { %6506 = vst [vmem:[#allocation5_spill] sm:$0xff] %v6053_v12 }
 0x401   : > { %v2929_v18 = vpop.f32.mrb[108].mxu1 }
 0x402   : > { %v2931_v55 = vpop.f32.mrb[109].mxu1  ;;  %v6113_v42 = vadd.f32 %v2929_v18, %v6086_v3 }
 0x403   : > { %v2852_v28 = vpop.f32.mrb[108].mxu0  ;;  %v6122_v56 = vadd.f32 %v2931_v55, %v6086_v3 }
 0x404   : > { %v2854_v60 = vpop.f32.mrb[109].mxu0  ;;  %v2853_v51 = vadd.f32 %v2852_v28, %v6086_v3  ;;  %v3328_v21 = vmul.f32 %v6038_v54, %v6113_v42  ;;  %v6139_v55 = vmul.f32 %v3660_v45, %v6113_v42 }
 0x405   : > { %v2855_v18 = vadd.f32 %v2854_v60, %v6086_v3  ;;  %v3329_v16 = vmul.f32 %v6001_v29, %v6122_v56  ;;  %v6152_v28 = vmul.f32 %v3664_v14, %v6122_v56  ;;  %v2935_v33 = vpop.f32.mrb[110].mxu1 }
 0x406   : > { %v2936_v45 = vadd.f32 %v2935_v33, %v6124_v7  ;;  %v3326_v36 = vmul.f32 %v6022_v2, %v2853_v51  ;;  %v3709_v60 = vmul.f32 %v3652_v11, %v2853_v51  ;;  %v2937_v22 = vpop.f32.mrb[111].mxu1  ;;  %v3352_v13 = vrot.slane %v3328_v21, 3 }
 0x407   : > { %v3327_v30 = vmul.f32 %v5989_v10, %v2855_v18  ;;  %v3710_v14 = vmul.f32 %v3656_v44, %v2855_v18  ;;  %v3353_v63 = vrot.slane %v3329_v16, 3  ;;  %v2858_v62 = vpop.f32.mrb[110].mxu0  ;;  %v2938_v32 = vadd.f32 %v2937_v22, %v6124_v7 }
 0x408   : > { %v2859_v33 = vadd.f32 %v2858_v62, %v6124_v7  ;;  %v2860_v15 = vpop.f32.mrb[111].mxu0  ;;  %v3350_v39 = vrot.slane %v3326_v36, 3  ;;  %v3733_v31 = vrot.slane %v3709_v60, 1  ;;  %v3834_v11 = vmul.f32 %v3783_v59, %v2936_v45 }
 0x409   : > { %v3351_v21 = vrot.slane %v3327_v30, 3  ;;  %v3377_v37 = vadd.f32 %v3353_v63, %v6122_v56  ;;  %v2861_v9 = vadd.f32 %v2860_v15, %v6124_v7  ;;  %v3734_v52 = vrot.slane %v3710_v14, 1 }
 0x40a   : > { %v3374_v44 = vadd.f32 %v3350_v39, %v2853_v51  ;;  %v3757_v16 = vadd.f32 %v3733_v31, %v2853_v51  ;;  %v3832_v22 = vmul.f32 %v3775_v17, %v2859_v33  ;;  %v3858_v62 = vrot.slane %v3834_v11, 2 }
 0x40b   : > { %v3375_v20 = vadd.f32 %v3351_v21, %v2855_v18  ;;  %v3452_v36 = vmul.f32 %v3404_v46, %v3377_v37  ;;  %v3572_v59 = vmul.f32 %v3524_v19, %v3377_v37  ;;  %v3758_v63 = vadd.f32 %v3734_v52, %v2855_v18 }
 0x40c   : > { %v3449_v30 = vmul.f32 %v3392_v61, %v3374_v44  ;;  %v6507_v31 = vrot.slane %v5973_v23, %v6018_v41  ;;  %v6508_v17 = vrot.slane %v6015_v53, %v5992_v57  ;;  %v3856_v51 = vrot.slane %v3832_v22, 2 }
 0x40d   : > { %v6509_v46 = vrot.slane %v5973_v23, %v5143_v25  ;;  %v6510_v19 = vrot.slane %v5973_v23, %v5992_v57  ;;  %v3476_v60 = vrot.slane %v3452_v36, 1  ;;  %v3596_v14 = vrot.slane %v3572_v59, 2 }
 0x40e   : > { %v3569_v39 = vmul.f32 %v6507_v31, %v3374_v44  ;;  %v3833_v15 = vmul.f32 %v6508_v17, %v2861_v9  ;;  %v3473_v61 = vrot.slane %v3449_v30, 1  ;;  %v3880_v21 = vadd.f32 %v3856_v51, %v3757_v16 }
 0x40f   : > { %v3450_v45 = vmul.f32 %v6509_v46, %v3375_v20  ;;  %v3570_v18 = vmul.f32 %v6510_v19, %v3375_v20  ;;  %v3500_v12 = vadd.f32 %v3476_v60, %v3377_v37  ;;  %v3376_v9 = vadd.f32 %v3352_v13, %v6113_v42 }
 0x410   : > { %v3593_v33 = vrot.slane %v3569_v39, 2  ;;  %v3857_v11 = vrot.slane %v3833_v15, 2  ;;  %v3497_v22 = vadd.f32 %v3473_v61, %v3374_v44  ;;  %v3892_v49 = vmul.f32 %v3880_v21, %v6022_v2 }
 0x411   : > { %v3474_v52 = vrot.slane %v3450_v45, 1  ;;  %v3594_v31 = vrot.slane %v3570_v18, 2  ;;  %v3735_v46 = vrot.slane %v6139_v55, 1  ;;  %v6511_v36 = vrot.slane %v5973_v23, %v5146_v26 }
 0x412   : > { %v3881_v17 = vadd.f32 %v3857_v11, %v3758_v63  ;;  %v6512_v30 = vrot.slane %v5973_v23, %v6025_v4  ;;  %v6204_v39 = vadd.f32 %v3596_v14, %v3500_v12  ;;  %v3617_v37 = vadd.f32 %v3593_v33, %v3497_v22 }
 0x413   : > { %v3498_v41 = vadd.f32 %v3474_v52, %v3375_v20  ;;  %v3451_v59 = vmul.f32 %v6511_v36, %v3376_v9  ;;  %v6513_v44 = vrot.slane %v6005_v47, %v5140_v24  ;;  %v3736_v55 = vrot.slane %v6152_v28, 1 }
 0x414   : > { %v3571_v16 = vmul.f32 %v6512_v30, %v3376_v9  ;;  %v3893_v13 = vmul.f32 %v3881_v17, %v5989_v10  ;;  %v3759_v51 = vadd.f32 %v3735_v46, %v6113_v42  ;;  %v6514_v23 = vrot.slane %v6005_v47, %v5143_v25 }
 0x415   : > { %v3967_v2 = vmul.f32 %v6513_v44, %v3892_v49  ;;  %v3618_v20 = vadd.f32 %v3594_v31, %v3498_v41  ;;  %v3475_v63 = vrot.slane %v3451_v59, 1  ;;  %v3760_v19 = vadd.f32 %v3736_v55, %v6122_v56  ;;  %v6532_v41 = vld [vmem:[#allocation4_spill] sm:$0xff] }
 0x416   : > { %v3595_v15 = vrot.slane %v3571_v16, 2  ;;  %v3968_v45 = vmul.f32 %v6514_v23, %v3893_v13  ;;  %v6515_v10 = vrot.slane %v6015_v53, %v6010_v0  ;;  %v3882_v49 = vadd.f32 %v3858_v62, %v3759_v51 }
 0x417   : > { %v3991_v12 = vrot.slane %v3967_v2, 6  ;;  %v3499_v60 = vadd.f32 %v3475_v63, %v3376_v9  ;;  %v6223_v28 = vrot.slane %v6130_v58, %v5146_v26  ;;  %v6516_v33 = vrot.slane %v5182_v48, 7 }
 0x418   : > { %v3835_v18 = vmul.f32 %v6515_v10, %v2938_v32  ;;  %v3992_v42 = vrot.slane %v3968_v45, 6  ;;  %v3894_v53 = vmul.f32 %v3882_v49, %v6038_v54  ;;  %v6235_v62 = vrot.slane %v6130_v58, %v5149_v27 }
 0x419   : > { %v4015_v14 = vadd.f32 %v3991_v12, %v3617_v37  ;;  %v6228_v56 = vmul.f32 %v6516_v33, %v5983_v35  ;;  %v3619_v11 = vadd.f32 %v3595_v15, %v3499_v60  ;;  %v6241_v48 = vrot.slane %v6130_v58, %v5140_v24  ;;  %v3083_v22 = vpop.f32.mrb[112].mxu1 }
 0x41a   : > { %v3859_v61 = vrot.slane %v3835_v18, 2  ;;  %v4016_v21 = vadd.f32 %v3992_v42, %v3618_v20  ;;  %v6517_v9 = vrot.slane %v6005_v47, %v5146_v26  ;;  %v6250_v46 = vrot.slane %v6130_v58, %v5143_v25  ;;  %v3085_v37 = vpop.f32.mrb[113].mxu1 }
 0x41b   : > { %v6256_v16 = vadd.f32 %v3083_v22, %v6086_v3  ;;  %v3006_v2 = vpop.f32.mrb[112].mxu0  ;;  %v6261_v55 = vadd.f32 %v3085_v37, %v6086_v3  ;;  %v6518_v63 = vrot.slane %v6005_v47, %v5149_v27 }
 0x41c   : > { %v3883_v52 = vadd.f32 %v3859_v61, %v3760_v19  ;;  %v3969_v54 = vmul.f32 %v6517_v9, %v3894_v53  ;;  %v4039_v59 = vcombine.low %v4015_v14, %v4016_v21  ;;  %v3007_v51 = vadd.f32 %v3006_v2, %v6086_v3  ;;  %v3008_v45 = vpop.f32.mrb[113].mxu0 }
 0x41d   : > { %v3332_v23 = vmul.f32 %v6080_v6, %v6256_v16  ;;  %v6519_v19 = vrot.slane %v6042_v8, %v5146_v26  ;;  %v6281_v18 = vadd.f32 %v3008_v45, %v6086_v3  ;;  %v3333_v60 = vmul.f32 %v6094_v5, %v6261_v55  ;;  %v3089_v47 = vpop.f32.mrb[114].mxu1 }
 0x41e   : > { %v3895_v30 = vmul.f32 %v3883_v52, %v6001_v29  ;;  %v3993_v44 = vrot.slane %v3969_v54, 6  ;;  %v6268_v29 = vrot.slane %v4039_v59, %v6068_v40  ;;  %v3330_v42 = vmul.f32 %v6077_v1, %v3007_v51 }
 0x41f   : > { %v3715_v10 = vmul.f32 %v6519_v19, %v6256_v16  ;;  %v6520_v14 = vrot.slane %v6042_v8, %v5140_v24  ;;  %v3356_v33 = vrot.slane %v3332_v23, 3  ;;  %v3331_v53 = vmul.f32 %v6091_v50, %v6281_v18  ;;  %v3012_v59 = vpop.f32.mrb[114].mxu0 }
 0x420   : > { %v3970_v15 = vmul.f32 %v6518_v63, %v3895_v30  ;;  %v4017_v12 = vadd.f32 %v3993_v44, %v3619_v11  ;;  %v3091_v11 = vpop.f32.mrb[115].mxu1  ;;  %v6521_v21 = vrot.slane %v6042_v8, %v5143_v25  ;;  %v3357_v9 = vrot.slane %v3333_v60, 3  ;;  %v3014_v63 = vpop.f32.mrb[115].mxu0 }
 0x421   : > { %v3713_v61 = vmul.f32 %v6520_v14, %v3007_v51  ;;  %v6522_v54 = vrot.slane %v6042_v8, %v5149_v27  ;;  %v3354_v37 = vrot.slane %v3330_v42, 3  ;;  %v3380_v44 = vadd.f32 %v3356_v33, %v6256_v16 }
 0x422   : > { %v3994_v49 = vrot.slane %v3970_v15, 6  ;;  %v3714_v52 = vmul.f32 %v6521_v21, %v6281_v18  ;;  %v3013_v2 = vadd.f32 %v3012_v59, %v6124_v7  ;;  %v3355_v15 = vrot.slane %v3331_v53, 3 }
 0x423   : > { %v3716_v22 = vmul.f32 %v6522_v54, %v6261_v55  ;;  %v3381_v23 = vadd.f32 %v3357_v9, %v6261_v55  ;;  %v3737_v45 = vrot.slane %v3713_v61, 1  ;;  %v3090_v19 = vadd.f32 %v3089_v47, %v6124_v7 }
 0x424   : > { %v4018_v30 = vadd.f32 %v3994_v49, %v6204_v39  ;;  %v3378_v14 = vadd.f32 %v3354_v37, %v3007_v51  ;;  %v6523_v8 = vrot.slane %v5980_v34, %v5146_v26  ;;  %v6524_v39 = vrot.slane %v5980_v34, %v6025_v4 }
 0x425   : > { %v3379_v42 = vadd.f32 %v3355_v15, %v6281_v18  ;;  %v6525_v33 = vrot.slane %v5980_v34, %v5149_v27  ;;  %v6526_v61 = vrot.slane %v5980_v34, %v6010_v0  ;;  %v6527_v54 = vrot.slane %v5980_v34, %v5140_v24 }
 0x426   : > { %v4040_v60 = vcombine.low %v4017_v12, %v4018_v30  ;;  %v3455_v21 = vmul.f32 %v6523_v8, %v3380_v44  ;;  %v3575_v49 = vmul.f32 %v6524_v39, %v3380_v44  ;;  %v3761_v12 = vadd.f32 %v3737_v45, %v3007_v51  ;;  %v6528_v30 = vld [vmem:[#allocation3_spill] sm:$0xff] }
 0x427   : > { %v3456_v53 = vmul.f32 %v6525_v33, %v3381_v23  ;;  %v3576_v47 = vmul.f32 %v6526_v61, %v3381_v23  ;;  %v3453_v59 = vmul.f32 %v6527_v54, %v3378_v14  ;;  %v6529_v37 = vrot.slane %v5980_v34, %v6528_v30 }
 0x428   : > { %v4056_v9 = vrot.slane %v4040_v60, %v6068_v40  ;;  %v3479_v15 = vrot.slane %v3455_v21, 1  ;;  %v3599_v39 = vrot.slane %v3575_v49, 2  ;;  %v6530_v33 = vrot.slane %v5980_v34, %v5143_v25 }
 0x429   : > { %v3573_v8 = vmul.f32 %v6529_v37, %v3378_v14  ;;  %v6531_v61 = vrot.slane %v5980_v34, %v5992_v57  ;;  %v3480_v45 = vrot.slane %v3456_v53, 1  ;;  %v3477_v13 = vrot.slane %v3453_v59, 1 }
 0x42a   : > { %v3454_v20 = vmul.f32 %v6530_v33, %v3379_v42  ;;  %v4071_v60 = vcombine.low %v6268_v29, %v4056_v9  ;;  %v3503_v54 = vadd.f32 %v3479_v15, %v3380_v44  ;;  %v3552_v21 = vrot.slane %v5983_v35, %v6025_v4 }
 0x42b   : > { %v3574_v51 = vmul.f32 %v6531_v61, %v3379_v42  ;;  %v3597_v36 = vrot.slane %v3573_v8, 2  ;;  %v3504_v31 = vadd.f32 %v3480_v45, %v3381_v23  ;;  %v3501_v49 = vadd.f32 %v3477_v13, %v3378_v14 }
 0x42c   : > { %v3478_v58 = vrot.slane %v3454_v20, 1  ;;  %v3600_v37 = vrot.slane %v3576_v47, 2  ;;  %v6533_v33 = vrot.slane %v6532_v41, %v6528_v30  ;;  %v3623_v34 = vadd.f32 %v3599_v39, %v3503_v54 }
 0x42d   : > { %v3598_v17 = vrot.slane %v3574_v51, 2  ;;  %v3739_v53 = vrot.slane %v3715_v10, 1  ;;  %v6534_v29 = vrot.slane %v6532_v41, %v6025_v4  ;;  %v3015_v20 = vadd.f32 %v3014_v63, %v6124_v7 }
 0x42e   : > { %v3836_v32 = vmul.f32 %v6533_v33, %v3013_v2  ;;  %v3502_v61 = vadd.f32 %v3478_v58, %v3379_v42  ;;  %v3621_v44 = vadd.f32 %v3597_v36, %v3501_v49  ;;  %v3738_v59 = vrot.slane %v3714_v52, 1 }
 0x42f   : > { %v3838_v9 = vmul.f32 %v6534_v29, %v3090_v19  ;;  %v3092_v8 = vadd.f32 %v3091_v11, %v6124_v7  ;;  %v3763_v13 = vadd.f32 %v3739_v53, %v6256_v16  ;;  %v6535_v2 = vrot.slane %v6532_v41, %v5992_v57  ;;  %v6539_v53 = vld [vmem:[#allocation5_spill] sm:$0xff] }
 0x430   : > { %v3860_v23 = vrot.slane %v3836_v32, 2  ;;  %v3622_v47 = vadd.f32 %v3598_v17, %v3502_v61  ;;  %v3762_v42 = vadd.f32 %v3738_v59, %v6281_v18  ;;  %v3624_v15 = vadd.f32 %v3600_v37, %v3504_v31 }
 0x431   : > { %v3862_v14 = vrot.slane %v3838_v9, 2  ;;  %v3837_v58 = vmul.f32 %v6535_v2, %v3015_v20  ;;  %v3740_v19 = vrot.slane %v3716_v22, 1  ;;  %v6536_v32 = vrot.slane %v6532_v41, %v6010_v0  ;;  %v3237_v61 = vpop.f32.mrb[116].mxu1 }
 0x432   : > { %v3884_v10 = vadd.f32 %v3860_v23, %v3761_v12  ;;  %v3436_v16 = vrot.slane %v5983_v35, %v5149_v27  ;;  %v3556_v52 = vrot.slane %v5983_v35, %v6010_v0  ;;  %v3424_v31 = vrot.slane %v5983_v35, %v5140_v24  ;;  %v3239_v59 = vpop.f32.mrb[117].mxu1 }
 0x433   : > { %v3886_v39 = vadd.f32 %v3862_v14, %v3763_v13  ;;  %v3861_v63 = vrot.slane %v3837_v58, 2  ;;  %v3839_v36 = vmul.f32 %v6536_v32, %v3092_v8  ;;  %v3764_v11 = vadd.f32 %v3740_v19, %v6261_v55 }
 0x434   : > { %v3896_v17 = vmul.f32 %v3884_v10, %v6077_v1  ;;  %v3544_v41 = vrot.slane %v5983_v35, %v6528_v30  ;;  %v6537_v51 = vrot.slane %v6044_v38, %v5140_v24  ;;  %v3428_v1 = vrot.slane %v5983_v35, %v5143_v25  ;;  %v3160_v10 = vpop.f32.mrb[116].mxu0 }
 0x435   : > { %v3898_v18 = vmul.f32 %v3886_v39, %v6080_v6  ;;  %v3885_v22 = vadd.f32 %v3861_v63, %v3762_v42  ;;  %v3863_v12 = vrot.slane %v3839_v36, 2  ;;  %v3548_v55 = vrot.slane %v5983_v35, %v5992_v57  ;;  %v3162_v32 = vpop.f32.mrb[117].mxu0 }
 0x436   : > { %v3971_v45 = vmul.f32 %v6537_v51, %v3896_v17  ;;  %v3807_v54 = vrot.slane %v6228_v56, %v6528_v30  ;;  %v6538_v6 = vrot.slane %v6044_v38, %v5146_v26  ;;  %v3950_v29 = vrot.slane %v6539_v53, %v5146_v26 }
 0x437   : > { %v3897_v37 = vmul.f32 %v3885_v22, %v6091_v50  ;;  %v3887_v33 = vadd.f32 %v3863_v12, %v3764_v11  ;;  %v6376_v9 = vrot.slane %v4071_v60, %v6068_v40  ;;  %v3238_v23 = vadd.f32 %v3237_v61, %v6086_v3 }
 0x438   : > { %v3973_v49 = vmul.f32 %v6538_v6, %v3898_v18  ;;  %v3995_v20 = vrot.slane %v3971_v45, 6  ;;  %v3811_v8 = vrot.slane %v6228_v56, %v5992_v57  ;;  %v6540_v14 = vrot.slane %v6044_v38, %v5143_v25 }
 0x439   : > { %v3899_v2 = vmul.f32 %v3887_v33, %v6094_v5  ;;  %v6386_v58 = vadd.f32 %v3239_v59, %v6086_v3  ;;  %v3336_v42 = vmul.f32 %v6223_v28, %v3238_v23  ;;  %v6541_v19 = vrot.slane %v6143_v43, %v5146_v26 }
 0x43a   : > { %v3997_v13 = vrot.slane %v3973_v49, 6  ;;  %v3972_v50 = vmul.f32 %v6540_v14, %v3897_v37  ;;  %v4019_v60 = vadd.f32 %v3995_v20, %v3621_v44  ;;  %v6393_v63 = vadd.f32 %v3160_v10, %v6086_v3  ;;  %v3243_v44 = vpop.f32.mrb[118].mxu1  ;;  %v3166_v20 = vpop.f32.mrb[118].mxu0 }
 0x43b   : > { %v3719_v39 = vmul.f32 %v6541_v19, %v3238_v23  ;;  %v6542_v5 = vrot.slane %v6044_v38, %v5149_v27  ;;  %v3337_v18 = vmul.f32 %v6235_v62, %v6386_v58  ;;  %v3360_v22 = vrot.slane %v3336_v42, 3  ;;  %v3245_v38 = vpop.f32.mrb[119].mxu1 }
 0x43c   : > { %v4021_v36 = vadd.f32 %v3997_v13, %v3623_v34  ;;  %v3996_v17 = vrot.slane %v3972_v50, 6  ;;  %v6543_v12 = vrot.slane %v6143_v43, %v5149_v27  ;;  %v3334_v45 = vmul.f32 %v6241_v48, %v6393_v63 }
 0x43d   : > { %v3974_v11 = vmul.f32 %v6542_v5, %v3899_v2  ;;  %v6544_v34 = vrot.slane %v6143_v43, %v5140_v24  ;;  %v3361_v33 = vrot.slane %v3337_v18, 3  ;;  %v6413_v61 = vadd.f32 %v3162_v32, %v6086_v3  ;;  %v3168_v2 = vpop.f32.mrb[119].mxu0 }
 0x43e   : > { %v3720_v51 = vmul.f32 %v6543_v12, %v6386_v58  ;;  %v4020_v49 = vadd.f32 %v3996_v17, %v3622_v47  ;;  %v3384_v59 = vadd.f32 %v3360_v22, %v3238_v23  ;;  %v3358_v13 = vrot.slane %v3334_v45, 3 }
 0x43f   : > { %v6410_v6 = vmul.f32 %v6544_v34, %v6393_v63  ;;  %v3998_v37 = vrot.slane %v3974_v11, 6  ;;  %v3244_v14 = vadd.f32 %v3243_v44, %v6124_v7  ;;  %v3743_v50 = vrot.slane %v3719_v39, 1 }
 0x440   : > { %v4041_v10 = vcombine.low %v4019_v60, %v4020_v49  ;;  %v3385_v19 = vadd.f32 %v3361_v33, %v6386_v58  ;;  %v3335_v5 = vmul.f32 %v6250_v46, %v6413_v61  ;;  %v6545_v47 = vrot.slane %v5983_v35, %v5146_v26 }
 0x441   : > { %v4022_v42 = vadd.f32 %v3998_v37, %v3624_v15  ;;  %v3579_v3 = vmul.f32 %v3552_v21, %v3384_v59  ;;  %v3382_v32 = vadd.f32 %v3358_v13, %v6393_v63  ;;  %v6546_v60 = vrot.slane %v6143_v43, %v5143_v25 }
 0x442   : > { %v3459_v17 = vmul.f32 %v6545_v47, %v3384_v59  ;;  %v4063_v39 = vrot.slane %v4041_v10, %v6068_v40  ;;  %v3460_v18 = vmul.f32 %v3436_v16, %v3385_v19  ;;  %v3580_v44 = vmul.f32 %v3556_v52, %v3385_v19 }
 0x443   : > { %v3718_v15 = vmul.f32 %v6546_v60, %v6413_v61  ;;  %v4042_v11 = vcombine.low %v4021_v36, %v4022_v42  ;;  %v3603_v12 = vrot.slane %v3579_v3, 2  ;;  %v3457_v21 = vmul.f32 %v3424_v31, %v3382_v32 }
 0x444   : > { %v3483_v22 = vrot.slane %v3459_v17, 1  ;;  %v3577_v45 = vmul.f32 %v3544_v41, %v3382_v32  ;;  %v3484_v49 = vrot.slane %v3460_v18, 1  ;;  %v3604_v43 = vrot.slane %v3580_v44, 2 }
 0x445   : > { %v4070_v34 = vrot.slane %v4042_v11, %v6068_v40  ;;  %v3359_v37 = vrot.slane %v3335_v5, 3  ;;  %v3481_v36 = vrot.slane %v3457_v21, 1  ;;  %v3767_v10 = vadd.f32 %v3743_v50, %v3238_v23 }
 0x446   : > { %v3507_v33 = vadd.f32 %v3483_v22, %v3384_v59  ;;  %v3601_v13 = vrot.slane %v3577_v45, 2  ;;  %v3508_v16 = vadd.f32 %v3484_v49, %v3385_v19  ;;  %v6547_v47 = vrot.slane %v6228_v56, %v6025_v4 }
 0x447   : > { %v4072_v42 = vcombine.low %v4063_v39, %v4070_v34  ;;  %v3383_v52 = vadd.f32 %v3359_v37, %v6413_v61  ;;  %v3505_v31 = vadd.f32 %v3481_v36, %v3382_v32  ;;  %v3246_v3 = vadd.f32 %v3245_v38, %v6124_v7 }
 0x448   : > { %v3842_v17 = vmul.f32 %v6547_v47, %v3244_v14  ;;  %v3627_v41 = vadd.f32 %v3603_v12, %v3507_v33  ;;  %v3744_v60 = vrot.slane %v3720_v51, 1  ;;  %v3628_v4 = vadd.f32 %v3604_v43, %v3508_v16 }
 0x449   : > { %v4086_v5 = vrot.slane %v4072_v42, %v6068_v40  ;;  %v3458_v59 = vmul.f32 %v3428_v1, %v3383_v52  ;;  %v3578_v23 = vmul.f32 %v3548_v55, %v3383_v52  ;;  %v6548_v38 = vrot.slane %v6228_v56, %v6010_v0 }
 0x44a   : > { %v3866_v50 = vrot.slane %v3842_v17, 2  ;;  %v3768_v51 = vadd.f32 %v3744_v60, %v6386_v58  ;;  %v3167_v1 = vadd.f32 %v3166_v20, %v6124_v7  ;;  %v3625_v11 = vadd.f32 %v3601_v13, %v3505_v31 }
 0x44b   : > { %v3843_v14 = vmul.f32 %v6548_v38, %v3246_v3  ;;  %v4087_v19 = vcombine.low %v6376_v9, %v4086_v5  ;;  %v3482_v35 = vrot.slane %v3458_v59, 1  ;;  %v3602_v55 = vrot.slane %v3578_v23, 2 }
 0x44c   : > { %v3890_v32 = vadd.f32 %v3866_v50, %v3767_v10  ;;  %v3741_v18 = vrot.slane %v6410_v6, 1  ;;  %v3840_v44 = vmul.f32 %v3807_v54, %v3167_v1  ;;  %v3169_v22 = vadd.f32 %v3168_v2, %v6124_v7 }
 0x44d   : > { %v3867_v39 = vrot.slane %v3843_v14, 2  ;;  %4114 = vst [vmem:[%s6454_s13] sm:$0xff] %v4087_v19  ;;  %v3506_v58 = vadd.f32 %v3482_v35, %v3383_v52  ;;  %v3742_v20 = vrot.slane %v3718_v15, 1  ;;  %v3954_v9 = vrot.slane %v6539_v53, %v5149_v27 }
 0x44e   : > { %v3902_v0 = vmul.f32 %v3890_v32, %v6223_v28  ;;  %v3765_v21 = vadd.f32 %v3741_v18, %v6393_v63  ;;  %v3864_v45 = vrot.slane %v3840_v44, 2  ;;  %v3841_v28 = vmul.f32 %v3811_v8, %v3169_v22 }
 0x44f   : > { %v3891_v12 = vadd.f32 %v3867_v39, %v3768_v51  ;;  %v3626_v30 = vadd.f32 %v3602_v55, %v3506_v58  ;;  %v3766_v54 = vadd.f32 %v3742_v20, %v6413_v61  ;;  %v3942_v27 = vrot.slane %v6539_v53, %v5140_v24 }
 0x450   : > { %v3977_v6 = vmul.f32 %v3950_v29, %v3902_v0  ;;  %v3888_v2 = vadd.f32 %v3864_v45, %v3765_v21  ;;  %v3865_v63 = vrot.slane %v3841_v28, 2  ;;  %v3946_v61 = vrot.slane %v6539_v53, %v5143_v25 }
 0x451   : > { %v3903_v7 = vmul.f32 %v3891_v12, %v6235_v62  ;;  %v6549_v52 = vlaneseq }
 0x452   : > { %v4001_v15 = vrot.slane %v3977_v6, 6  ;;  %v3900_v49 = vmul.f32 %v3888_v2, %v6241_v48  ;;  %v3889_v29 = vadd.f32 %v3865_v63, %v3766_v54 }
 0x453   : > { %v3978_v34 = vmul.f32 %v3954_v9, %v3903_v7  ;;  %vm4117_vm4 = vcmp.lt.s32.totalorder %v6549_v52, 512 }
 0x454   : > { %v4025_v26 = vadd.f32 %v4001_v15, %v3627_v41  ;;  %v3975_v57 = vmul.f32 %v3942_v27, %v3900_v49  ;;  %v3901_v56 = vmul.f32 %v3889_v29, %v6250_v46 }
 0x455   : > { %v4002_v43 = vrot.slane %v3978_v34, 6 }
 0x456   : > { %v3999_v8 = vrot.slane %v3975_v57, 6  ;;  %v3976_v37 = vmul.f32 %v3946_v61, %v3901_v56 }
 0x457   : > { %v4026_v62 = vadd.f32 %v4002_v43, %v3628_v4 }
 0x458   : > { %v4023_v24 = vadd.f32 %v3999_v8, %v3625_v11  ;;  %v4000_v36 = vrot.slane %v3976_v37, 6 }
 0x459   : > { %v4089_v33 = vcombine.low %v4025_v26, %v4026_v62 }
 0x45a   : > { %v4024_v13 = vadd.f32 %v4000_v36, %v3626_v30 }
 0x45b   : > { %v4103_v48 = vrot.slane %v4089_v33, %v6068_v40 }
 0x45c   : > { %v4088_v10 = vcombine.low %v4023_v24, %v4024_v13 }
 0x45e   : > { %v4096_v42 = vrot.slane %v4088_v10, %v6068_v40 }
 0x460   : > { %v4104_v16 = vcombine.low %v4096_v42, %v4103_v48 }
 0x462   : > { %v4111_v25 = vrot.slane %v4104_v16, %v6068_v40 }
 0x464   : > { %4119 = vst.msk [vmem:[%s6454_s13 + $0x8] sm:$0xf] %vm4117_vm4, %v4111_v25 }
 0x465 PF: > { %s14_s14 = sadd.s32 1, %s5026_s14  }
 0x466   : > { %p11_p4 = scmp.ge.s32.totalorder %s14_s14, 4  }
 0x468   :  { %13 = sbr.rel (!%p11_p4) target bundleno = 2 (0x2), region = 62 }

</bundles_post_ra>
